<compile_context>
chip_gen: v6e
topology: v6e:2x2x1
jax: 0.10.0
libtpu: 0.0.40
codegen_flags: <defaults>
</compile_context>

<pallas_src>
import numpy as np
import jax
import jax.numpy as jnp
from jax.experimental import pallas as pl
from jax.experimental.pallas import tpu as pltpu


# ----------------------------------------------------------------------------
# Kernel 1: fused input projection + time-chunked bidirectional LSTM recurrence
#           + fused Linear(2H,1) head partials.
# ----------------------------------------------------------------------------
def _bilstm_kernel(xf_ref, xb_ref, wf_ref, wb_ref, bf_ref, bb_ref, whh_ref, wout_ref,
                   lf_ref, lb_ref,
                   gf_scr, gb_scr, hf_scr, cf_scr, hb_scr, cb_scr):
    # xf_ref  : (TT*B, E) embedding rows for time chunk n           (forward direction)
    # xb_ref  : (TT*B, E) embedding rows for time chunk NT-1-n      (backward direction)
    # wf/wb   : (E, 4H)   per-direction input weights
    # bf/bb   : (1, 4H)   per-direction gate biases (b_ih + b_hh folded)
    # whh_ref : (2H, 8H)  block_diag(Whh_f, Whh_b) — one MXU dot per step for both dirs
    # wout_ref: (1, 2H)   output layer weights [w_f | w_b]
    # lf_ref  : (TT, B)   forward partial logits  (time ascending)
    # lb_ref  : (TT, B)   backward partial logits (already at their final time positions)
    # gf/gb_scr: (TT*B, 4H) per-chunk input pre-activations (VMEM only, never hit HBM)
    # h*/c*_scr: (B, H)   carry state, persists across grid steps
    n = pl.program_id(0)
    TT, B = lf_ref.shape
    H4 = wf_ref.shape[1]
    H = H4 // 4

    @pl.when(n == 0)
    def _():
        hf_scr[...] = jnp.zeros_like(hf_scr)
        cf_scr[...] = jnp.zeros_like(cf_scr)
        hb_scr[...] = jnp.zeros_like(hb_scr)
        cb_scr[...] = jnp.zeros_like(cb_scr)

    # Hoisted per-chunk input projection: two MXU matmuls over the whole chunk
    # (instead of T tiny per-step dots, and instead of a separate kernel + HBM round trip).
    gf_scr[...] = jnp.dot(xf_ref[...], wf_ref[...],
                          preferred_element_type=jnp.float32) + bf_ref[...]
    gb_scr[...] = jnp.dot(xb_ref[...], wb_ref[...],
                          preferred_element_type=jnp.float32) + bb_ref[...]

    whh = whh_ref[...]
    wf_out = wout_ref[:, :H]          # (1, H)
    wb_out = wout_ref[:, H:]          # (1, H)

    def one_dir(g, c):
        # PyTorch gate order [i, f, g, o] along the 4H axis.
        i_g = jax.nn.sigmoid(g[:, 0 * H:1 * H])
        f_g = jax.nn.sigmoid(g[:, 1 * H:2 * H])
        g_g = jnp.tanh(g[:, 2 * H:3 * H])
        o_g = jax.nn.sigmoid(g[:, 3 * H:4 * H])
        c_new = f_g * c + i_g * g_g
        h_new = o_g * jnp.tanh(c_new)
        return h_new, c_new

    def step(s, carry):
        hf, cf, hb, cb = carry
        h_cat = jnp.concatenate([hf, hb], axis=-1)                       # (B, 2H)
        g_rec = jnp.dot(h_cat, whh, preferred_element_type=jnp.float32)  # (B, 8H), one MXU call
        g_f = g_rec[:, :H4] + gf_scr[pl.ds(s * B, B), :]                 # fwd time  n*TT + s
        g_b = g_rec[:, H4:] + gb_scr[pl.ds((TT - 1 - s) * B, B), :]      # bwd time  T-1-(n*TT+s)
        hf, cf = one_dir(g_f, cf)
        hb, cb = one_dir(g_b, cb)
        # Fused Linear(2H,1) head: per-step partial logits (hidden states never hit HBM).
        lf_ref[pl.ds(s, 1), :] = jnp.sum(hf * wf_out, axis=-1)[None, :]
        lb_ref[pl.ds(TT - 1 - s, 1), :] = jnp.sum(hb * wb_out, axis=-1)[None, :]
        return hf, cf, hb, cb

    hf_f, cf_f, hb_f, cb_f = jax.lax.fori_loop(
        0, TT, step,
        (hf_scr[...], cf_scr[...], hb_scr[...], cb_scr[...]),
        unroll=True)

    hf_scr[...] = hf_f
    cf_scr[...] = cf_f
    hb_scr[...] = hb_f
    cb_scr[...] = cb_f


def _pick_time_chunk(T, cap=32):
    if T <= cap:
        return T
    tt = (cap // 8) * 8
    while tt >= 8:
        if T % tt == 0:
            return tt
        tt -= 8
    return T  # no clean divisor: single chunk (OK for moderate T)


def bilstm_head_partials(x2d, wih_f, wih_b, b_f, b_b, whh_cat, w_out, T, B, H):
    """x2d: (T*B, E) embedded tokens (time-major).  Returns per-direction partial logits (T,B)."""
    E = x2d.shape[1]
    TT = _pick_time_chunk(T)
    NT = T // TT
    TTB = TT * B

    lf, lb = pl.pallas_call(
        _bilstm_kernel,
        out_shape=(jax.ShapeDtypeStruct((T, B), jnp.float32),
                   jax.ShapeDtypeStruct((T, B), jnp.float32)),
        grid=(NT,),
        in_specs=[
            pl.BlockSpec((TTB, E), lambda n: (n, 0)),            # x rows, ascending chunks (fwd)
            pl.BlockSpec((TTB, E), lambda n: (NT - 1 - n, 0)),   # x rows, descending chunks (bwd)
            pl.BlockSpec((E, 4 * H), lambda n: (0, 0)),          # resident weights
            pl.BlockSpec((E, 4 * H), lambda n: (0, 0)),
            pl.BlockSpec((1, 4 * H), lambda n: (0, 0)),
            pl.BlockSpec((1, 4 * H), lambda n: (0, 0)),
            pl.BlockSpec((2 * H, 8 * H), lambda n: (0, 0)),
            pl.BlockSpec((1, 2 * H), lambda n: (0, 0)),
        ],
        out_specs=(
            pl.BlockSpec((TT, B), lambda n: (n, 0)),
            pl.BlockSpec((TT, B), lambda n: (NT - 1 - n, 0)),
        ),
        scratch_shapes=[pltpu.VMEM((TTB, 4 * H), jnp.float32),   # fwd chunk pre-activations
                        pltpu.VMEM((TTB, 4 * H), jnp.float32),   # bwd chunk pre-activations
                        pltpu.VMEM((B, H), jnp.float32),         # h_f carry
                        pltpu.VMEM((B, H), jnp.float32),         # c_f carry
                        pltpu.VMEM((B, H), jnp.float32),         # h_b carry
                        pltpu.VMEM((B, H), jnp.float32)],        # c_b carry
        compiler_params=pltpu.CompilerParams(dimension_semantics=("arbitrary",)),
    )(x2d, x2d, wih_f, wih_b, b_f, b_b, whh_cat, w_out)
    return lf, lb


# ----------------------------------------------------------------------------
# Kernel 2: epilogue — logits, sigmoid, bernoulli sample (lane-friendly 2-D shapes).
# ----------------------------------------------------------------------------
def _head_kernel(lf_ref, lb_ref, u_ref, b_ref, z_ref, logit_ref, prob_ref):
    logits = lf_ref[...] + lb_ref[...] + b_ref[0]
    probs = jax.nn.sigmoid(logits)
    z_ref[...] = (u_ref[...] < probs).astype(jnp.float32)   # torch.bernoulli semantics
    logit_ref[...] = logits
    prob_ref[...] = probs


def head_pallas(lf, lb, b_out, u):
    T, B = lf.shape
    vmem = pl.BlockSpec(memory_space=pltpu.MemorySpace.VMEM)
    smem = pl.BlockSpec(memory_space=pltpu.MemorySpace.SMEM)
    z, logits, probs = pl.pallas_call(
        _head_kernel,
        out_shape=(jax.ShapeDtypeStruct((T, B), jnp.float32),) * 3,
        in_specs=[vmem, vmem, vmem, smem],
        out_specs=(vmem, vmem, vmem),
    )(lf, lb, u, b_out.reshape(1).astype(jnp.float32))
    # module interface is (T, B, 1) like PyTorch Linear(.,1) output
    return z[..., None], logits[..., None], probs[..., None]


# ----------------------------------------------------------------------------
# Module wrapper (glue in plain JAX: embedding gather, weight layout, RNG).
# ----------------------------------------------------------------------------
class SampleGeneratorPallas:
    def __init__(self, key, vocab_size, emb_dim, hidden_size):
        self.H = hidden_size
        ks = jax.random.split(key, 10)
        s_h = 1.0 / np.sqrt(hidden_size)
        u = lambda k, shape, s: jax.random.uniform(k, shape, jnp.float32, -s, s)
        self.embed = u(ks[0], (vocab_size, emb_dim), 1.0)
        # per-direction LSTM weights, stored pre-transposed for x @ W
        self.wih_f = u(ks[1], (emb_dim, 4 * hidden_size), s_h)
        self.whh_f = u(ks[2], (hidden_size, 4 * hidden_size), s_h)
        self.b_f = u(ks[3], (1, 4 * hidden_size), s_h)   # b_ih + b_hh folded together
        self.wih_b = u(ks[4], (emb_dim, 4 * hidden_size), s_h)
        self.whh_b = u(ks[5], (hidden_size, 4 * hidden_size), s_h)
        self.b_b = u(ks[6], (1, 4 * hidden_size), s_h)
        # output layer Linear(2H, 1)
        s_o = 1.0 / np.sqrt(2 * hidden_size)
        self.w_out = u(ks[7], (1, 2 * hidden_size), s_o)
        self.b_out = u(ks[8], (1,), s_o)

        # fused recurrent-weight layout (built once): block_diag(Whh_f, Whh_b)
        H = hidden_size
        whh_cat = jnp.zeros((2 * H, 8 * H), jnp.float32)
        whh_cat = whh_cat.at[:H, :4 * H].set(self.whh_f)
        whh_cat = whh_cat.at[H:, 4 * H:].set(self.whh_b)
        self.whh_cat = whh_cat

    def forward(self, inputs, rng_key, lengths=None):
        # TODO(synk): lengths / pack_padded_sequence path (variable-length packing) not
        # implemented; only the lengths=None path of the reference forward is reproduced.
        T, B = inputs.shape
        H = self.H
        x = self.embed[inputs]                          # (T, B, E) embedding gather (XLA glue)
        x2d = x.reshape(T * B, -1)                      # time-major rows, layout-free reshape
        lf, lb = bilstm_head_partials(x2d, self.wih_f, self.wih_b, self.b_f, self.b_b,
                                      self.whh_cat, self.w_out, T, B, H)
        # uniforms from jax.random (works on TPU and in interpret mode; TPU HW PRNG does not)
        u = jax.random.uniform(rng_key, (T, B), jnp.float32)
        return head_pallas(lf, lb, self.b_out, u)


# ----------------------------------------------------------------------------
# Pure-JAX reference (correctness check of the deterministic outputs).
# ----------------------------------------------------------------------------
def reference_forward(model, inputs):
    x = model.embed[inputs]
    T, B, E = x.shape
    H = model.H

    def make_step(wih, whh, b):
        def step(carry, xt):
            h, c = carry
            g = xt @ wih + h @ whh + b
            i = jax.nn.sigmoid(g[:, 0 * H:1 * H])
            f = jax.nn.sigmoid(g[:, 1 * H:2 * H])
            gg = jnp.tanh(g[:, 2 * H:3 * H])
            o = jax.nn.sigmoid(g[:, 3 * H:4 * H])
            c = f * c + i * gg
            h = o * jnp.tanh(c)
            return (h, c), h
        return step

    h0 = (jnp.zeros((B, H), jnp.float32), jnp.zeros((B, H), jnp.float32))
    _, out_f = jax.lax.scan(make_step(model.wih_f, model.whh_f, model.b_f), h0, x)
    _, out_b_rev = jax.lax.scan(make_step(model.wih_b, model.whh_b, model.b_b), h0, x[::-1])
    out_b = out_b_rev[::-1]
    out = jnp.concatenate([out_f, out_b], axis=-1)            # (T, B, 2H)
    logits = out @ model.w_out.T + model.b_out                 # (T, B, 1)
    return logits, jax.nn.sigmoid(logits)


if __name__ == "__main__":
    T, B, E, H, VOCAB = 8, 2, 32, 32, 50

    key = jax.random.PRNGKey(0)
    k_param, k_tok, k_bern = jax.random.split(key, 3)
    model = SampleGeneratorPallas(k_param, VOCAB, E, H)

    inputs = jax.random.randint(k_tok, (T, B), 0, VOCAB, dtype=jnp.int32)

    z_mask, z_logits, z_probs = model.forward(inputs, k_bern)
    jax.block_until_ready((z_mask, z_logits, z_probs))

    # correctness check against pure-JAX reference (deterministic outputs only)
    ref_logits, ref_probs = reference_forward(model, inputs)
    np.testing.assert_allclose(np.asarray(z_logits), np.asarray(ref_logits),
                               rtol=1e-4, atol=1e-4)
    np.testing.assert_allclose(np.asarray(z_probs), np.asarray(ref_probs),
                               rtol=1e-4, atol=1e-4)
    assert z_mask.shape == (T, B, 1)
    assert bool(jnp.all((z_mask == 0.0) | (z_mask == 1.0)))

    print("KERNEL_OK")
</pallas_src>

<mosaic_0001>
module attributes {stable_mosaic.version = 11 : i64} {
  func.func @_bilstm_kernel(%arg0: i32, %arg1: memref<16x32xf32, #tpu.memory_space<vmem>>, %arg2: memref<16x32xf32, #tpu.memory_space<vmem>>, %arg3: memref<32x128xf32, #tpu.memory_space<vmem>>, %arg4: memref<32x128xf32, #tpu.memory_space<vmem>>, %arg5: memref<1x128xf32, #tpu.memory_space<vmem>>, %arg6: memref<1x128xf32, #tpu.memory_space<vmem>>, %arg7: memref<64x256xf32, #tpu.memory_space<vmem>>, %arg8: memref<1x64xf32, #tpu.memory_space<vmem>>, %arg9: memref<8x2xf32, #tpu.memory_space<vmem>>, %arg10: memref<8x2xf32, #tpu.memory_space<vmem>>, %arg11: memref<16x128xf32, #tpu.memory_space<vmem>>, %arg12: memref<16x128xf32, #tpu.memory_space<vmem>>, %arg13: memref<2x32xf32, #tpu.memory_space<vmem>>, %arg14: memref<2x32xf32, #tpu.memory_space<vmem>>, %arg15: memref<2x32xf32, #tpu.memory_space<vmem>>, %arg16: memref<2x32xf32, #tpu.memory_space<vmem>>) attributes {dimension_semantics = [#tpu.dimension_semantics<arbitrary>], iteration_bounds = array<i64: 1>, scalar_prefetch = 0 : i64, scratch_operands = 6 : i64, tpu.core_type = #tpu.core_type<tc>, window_params = [{transform_indices = @transform_0, window_bounds = array<i64: 16, 32>}, {transform_indices = @transform_1, window_bounds = array<i64: 16, 32>}, {pipeline_mode = #tpu.pipeline_mode<synchronous>, transform_indices = @transform_2, window_bounds = array<i64: 32, 128>}, {pipeline_mode = #tpu.pipeline_mode<synchronous>, transform_indices = @transform_3, window_bounds = array<i64: 32, 128>}, {pipeline_mode = #tpu.pipeline_mode<synchronous>, transform_indices = @transform_4, window_bounds = array<i64: 1, 128>}, {pipeline_mode = #tpu.pipeline_mode<synchronous>, transform_indices = @transform_5, window_bounds = array<i64: 1, 128>}, {pipeline_mode = #tpu.pipeline_mode<synchronous>, transform_indices = @transform_6, window_bounds = array<i64: 64, 256>}, {pipeline_mode = #tpu.pipeline_mode<synchronous>, transform_indices = @transform_7, window_bounds = array<i64: 1, 64>}, {transform_indices = @transform_8, window_bounds = array<i64: 8, 2>}, {transform_indices = @transform_9, window_bounds = array<i64: 8, 2>}]} {
    %c0_i32 = arith.constant 0 : i32
    %0 = arith.cmpi eq, %arg0, %c0_i32 : i32
    %1 = arith.extui %0 : i1 to i32
    %c0_i32_0 = arith.constant 0 : i32
    %2 = arith.cmpi ne, %1, %c0_i32_0 : i32
    scf.if %2 {
      %cst_175 = arith.constant 0.000000e+00 : f32
      %636 = vector.broadcast %cst_175 : f32 to vector<2x32xf32>
      %c0_176 = arith.constant 0 : index
      %c0_177 = arith.constant 0 : index
      %637 = vector.load %arg13[%c0_176, %c0_177] : memref<2x32xf32, #tpu.memory_space<vmem>>, vector<2x32xf32>
      tpu.vector_store %arg13[%c0_176, %c0_177], %636 {strides = array<i32>} : memref<2x32xf32, #tpu.memory_space<vmem>>, vector<2x32xf32>,
      %cst_178 = arith.constant 0.000000e+00 : f32
      %638 = vector.broadcast %cst_178 : f32 to vector<2x32xf32>
      %c0_179 = arith.constant 0 : index
      %c0_180 = arith.constant 0 : index
      %639 = vector.load %arg14[%c0_179, %c0_180] : memref<2x32xf32, #tpu.memory_space<vmem>>, vector<2x32xf32>
      tpu.vector_store %arg14[%c0_179, %c0_180], %638 {strides = array<i32>} : memref<2x32xf32, #tpu.memory_space<vmem>>, vector<2x32xf32>,
      %cst_181 = arith.constant 0.000000e+00 : f32
      %640 = vector.broadcast %cst_181 : f32 to vector<2x32xf32>
      %c0_182 = arith.constant 0 : index
      %c0_183 = arith.constant 0 : index
      %641 = vector.load %arg15[%c0_182, %c0_183] : memref<2x32xf32, #tpu.memory_space<vmem>>, vector<2x32xf32>
      tpu.vector_store %arg15[%c0_182, %c0_183], %640 {strides = array<i32>} : memref<2x32xf32, #tpu.memory_space<vmem>>, vector<2x32xf32>,
      %cst_184 = arith.constant 0.000000e+00 : f32
      %642 = vector.broadcast %cst_184 : f32 to vector<2x32xf32>
      %c0_185 = arith.constant 0 : index
      %c0_186 = arith.constant 0 : index
      %643 = vector.load %arg16[%c0_185, %c0_186] : memref<2x32xf32, #tpu.memory_space<vmem>>, vector<2x32xf32>
      tpu.vector_store %arg16[%c0_185, %c0_186], %642 {strides = array<i32>} : memref<2x32xf32, #tpu.memory_space<vmem>>, vector<2x32xf32>,
    } else {
    }
    %c0 = arith.constant 0 : index
    %c0_1 = arith.constant 0 : index
    %3 = vector.load %arg1[%c0, %c0_1] : memref<16x32xf32, #tpu.memory_space<vmem>>, vector<16x32xf32>
    %c0_2 = arith.constant 0 : index
    %c0_3 = arith.constant 0 : index
    %4 = vector.load %arg3[%c0_2, %c0_3] : memref<32x128xf32, #tpu.memory_space<vmem>>, vector<32x128xf32>
    %cst = arith.constant dense<0.000000e+00> : vector<16x128xf32>
    %5 = tpu.matmul %3, %4, %cst {dimension_numbers = #tpu.dot_dimension_numbers<[1], [0], [0], [1], [0, 0, 1, 1], [], []>} : vector<16x32xf32>, vector<32x128xf32>, vector<16x128xf32> -> vector<16x128xf32>
    %c0_4 = arith.constant 0 : index
    %c0_5 = arith.constant 0 : index
    %6 = vector.load %arg5[%c0_4, %c0_5] : memref<1x128xf32, #tpu.memory_space<vmem>>, vector<1x128xf32>
    %7 = vector.broadcast %6 : vector<1x128xf32> to vector<16x128xf32>
    %8 = arith.addf %5, %7 : vector<16x128xf32>
    %c0_6 = arith.constant 0 : index
    %c0_7 = arith.constant 0 : index
    %9 = vector.load %arg11[%c0_6, %c0_7] : memref<16x128xf32, #tpu.memory_space<vmem>>, vector<16x128xf32>
    tpu.vector_store %arg11[%c0_6, %c0_7], %8 {strides = array<i32>} : memref<16x128xf32, #tpu.memory_space<vmem>>, vector<16x128xf32>,
    %c0_8 = arith.constant 0 : index
    %c0_9 = arith.constant 0 : index
    %10 = vector.load %arg2[%c0_8, %c0_9] : memref<16x32xf32, #tpu.memory_space<vmem>>, vector<16x32xf32>
    %c0_10 = arith.constant 0 : index
    %c0_11 = arith.constant 0 : index
    %11 = vector.load %arg4[%c0_10, %c0_11] : memref<32x128xf32, #tpu.memory_space<vmem>>, vector<32x128xf32>
    %cst_12 = arith.constant dense<0.000000e+00> : vector<16x128xf32>
    %12 = tpu.matmul %10, %11, %cst_12 {dimension_numbers = #tpu.dot_dimension_numbers<[1], [0], [0], [1], [0, 0, 1, 1], [], []>} : vector<16x32xf32>, vector<32x128xf32>, vector<16x128xf32> -> vector<16x128xf32>
    %c0_13 = arith.constant 0 : index
    %c0_14 = arith.constant 0 : index
    %13 = vector.load %arg6[%c0_13, %c0_14] : memref<1x128xf32, #tpu.memory_space<vmem>>, vector<1x128xf32>
    %14 = vector.broadcast %13 : vector<1x128xf32> to vector<16x128xf32>
    %15 = arith.addf %12, %14 : vector<16x128xf32>
    %c0_15 = arith.constant 0 : index
    %c0_16 = arith.constant 0 : index
    %16 = vector.load %arg12[%c0_15, %c0_16] : memref<16x128xf32, #tpu.memory_space<vmem>>, vector<16x128xf32>
    tpu.vector_store %arg12[%c0_15, %c0_16], %15 {strides = array<i32>} : memref<16x128xf32, #tpu.memory_space<vmem>>, vector<16x128xf32>,
    %c0_17 = arith.constant 0 : index
    %c0_18 = arith.constant 0 : index
    %17 = vector.load %arg7[%c0_17, %c0_18] : memref<64x256xf32, #tpu.memory_space<vmem>>, vector<64x256xf32>
    %c0_19 = arith.constant 0 : index
    %c0_20 = arith.constant 0 : index
    %18 = vector.load %arg8[%c0_19, %c0_20] : memref<1x64xf32, #tpu.memory_space<vmem>>, vector<1x32xf32>
    %c0_21 = arith.constant 0 : index
    %c32 = arith.constant 32 : index
    %19 = vector.load %arg8[%c0_21, %c32] : memref<1x64xf32, #tpu.memory_space<vmem>>, vector<1x32xf32>
    %c0_22 = arith.constant 0 : index
    %c0_23 = arith.constant 0 : index
    %20 = vector.load %arg13[%c0_22, %c0_23] : memref<2x32xf32, #tpu.memory_space<vmem>>, vector<2x32xf32>
    %c0_24 = arith.constant 0 : index
    %c0_25 = arith.constant 0 : index
    %21 = vector.load %arg14[%c0_24, %c0_25] : memref<2x32xf32, #tpu.memory_space<vmem>>, vector<2x32xf32>
    %c0_26 = arith.constant 0 : index
    %c0_27 = arith.constant 0 : index
    %22 = vector.load %arg15[%c0_26, %c0_27] : memref<2x32xf32, #tpu.memory_space<vmem>>, vector<2x32xf32>
    %c0_28 = arith.constant 0 : index
    %c0_29 = arith.constant 0 : index
    %23 = vector.load %arg16[%c0_28, %c0_29] : memref<2x32xf32, #tpu.memory_space<vmem>>, vector<2x32xf32>
    %c0_i32_30 = arith.constant 0 : i32
    %24 = tpu.concatenate %20, %22 in 1 : vector<2x32xf32>, vector<2x32xf32> -> vector<2x64xf32>
    %cst_31 = arith.constant dense<0.000000e+00> : vector<2x256xf32>
    %25 = tpu.matmul %24, %17, %cst_31 {dimension_numbers = #tpu.dot_dimension_numbers<[1], [0], [0], [1], [0, 0, 1, 1], [], []>} : vector<2x64xf32>, vector<64x256xf32>, vector<2x256xf32> -> vector<2x256xf32>
    %26 = vector.extract_strided_slice %25 {offsets = [0, 0], sizes = [2, 128], strides = [1, 1]} : vector<2x256xf32> to vector<2x128xf32>
    %c2_i32 = arith.constant 2 : i32
    %27 = arith.muli %c0_i32_30, %c2_i32 : i32
    %28 = arith.index_cast %27 : i32 to index
    %c0_32 = arith.constant 0 : index
    %29 = vector.load %arg11[%28, %c0_32] : memref<16x128xf32, #tpu.memory_space<vmem>>, vector<2x128xf32>
    %30 = arith.addf %26, %29 : vector<2x128xf32>
    %31 = vector.extract_strided_slice %25 {offsets = [0, 128], sizes = [2, 128], strides = [1, 1]} : vector<2x256xf32> to vector<2x128xf32>
    %c7_i32 = arith.constant 7 : i32
    %32 = arith.subi %c7_i32, %c0_i32_30 : i32
    %c2_i32_33 = arith.constant 2 : i32
    %33 = arith.muli %32, %c2_i32_33 : i32
    %34 = arith.index_cast %33 : i32 to index
    %c0_34 = arith.constant 0 : index
    %35 = vector.load %arg12[%34, %c0_34] : memref<16x128xf32, #tpu.memory_space<vmem>>, vector<2x128xf32>
    %36 = arith.addf %31, %35 : vector<2x128xf32>
    %37 = vector.extract_strided_slice %30 {offsets = [0, 0], sizes = [2, 32], strides = [1, 1]} : vector<2x128xf32> to vector<2x32xf32>
    %38 = arith.negf %37 : vector<2x32xf32>
    %39 = math.exp %38 : vector<2x32xf32>
    %cst_35 = arith.constant 1.000000e+00 : f32
    %40 = vector.broadcast %cst_35 : f32 to vector<2x32xf32>
    %41 = arith.addf %40, %39 : vector<2x32xf32>
    %42 = arith.divf %40, %41 : vector<2x32xf32>
    %43 = vector.extract_strided_slice %30 {offsets = [0, 32], sizes = [2, 32], strides = [1, 1]} : vector<2x128xf32> to vector<2x32xf32>
    %44 = arith.negf %43 : vector<2x32xf32>
    %45 = math.exp %44 : vector<2x32xf32>
    %cst_36 = arith.constant 1.000000e+00 : f32
    %46 = vector.broadcast %cst_36 : f32 to vector<2x32xf32>
    %47 = arith.addf %46, %45 : vector<2x32xf32>
    %48 = arith.divf %46, %47 : vector<2x32xf32>
    %49 = vector.extract_strided_slice %30 {offsets = [0, 64], sizes = [2, 32], strides = [1, 1]} : vector<2x128xf32> to vector<2x32xf32>
    %50 = math.tanh %49 : vector<2x32xf32>
    %51 = vector.extract_strided_slice %30 {offsets = [0, 96], sizes = [2, 32], strides = [1, 1]} : vector<2x128xf32> to vector<2x32xf32>
    %52 = arith.negf %51 : vector<2x32xf32>
    %53 = math.exp %52 : vector<2x32xf32>
    %cst_37 = arith.constant 1.000000e+00 : f32
    %54 = vector.broadcast %cst_37 : f32 to vector<2x32xf32>
    %55 = arith.addf %54, %53 : vector<2x32xf32>
    %56 = arith.divf %54, %55 : vector<2x32xf32>
    %57 = arith.mulf %48, %21 : vector<2x32xf32>
    %58 = arith.mulf %42, %50 : vector<2x32xf32>
    %59 = arith.addf %57, %58 : vector<2x32xf32>
    %60 = math.tanh %59 : vector<2x32xf32>
    %61 = arith.mulf %56, %60 : vector<2x32xf32>
    %62 = vector.extract_strided_slice %36 {offsets = [0, 0], sizes = [2, 32], strides = [1, 1]} : vector<2x128xf32> to vector<2x32xf32>
    %63 = arith.negf %62 : vector<2x32xf32>
    %64 = math.exp %63 : vector<2x32xf32>
    %cst_38 = arith.constant 1.000000e+00 : f32
    %65 = vector.broadcast %cst_38 : f32 to vector<2x32xf32>
    %66 = arith.addf %65, %64 : vector<2x32xf32>
    %67 = arith.divf %65, %66 : vector<2x32xf32>
    %68 = vector.extract_strided_slice %36 {offsets = [0, 32], sizes = [2, 32], strides = [1, 1]} : vector<2x128xf32> to vector<2x32xf32>
    %69 = arith.negf %68 : vector<2x32xf32>
    %70 = math.exp %69 : vector<2x32xf32>
    %cst_39 = arith.constant 1.000000e+00 : f32
    %71 = vector.broadcast %cst_39 : f32 to vector<2x32xf32>
    %72 = arith.addf %71, %70 : vector<2x32xf32>
    %73 = arith.divf %71, %72 : vector<2x32xf32>
    %74 = vector.extract_strided_slice %36 {offsets = [0, 64], sizes = [2, 32], strides = [1, 1]} : vector<2x128xf32> to vector<2x32xf32>
    %75 = math.tanh %74 : vector<2x32xf32>
    %76 = vector.extract_strided_slice %36 {offsets = [0, 96], sizes = [2, 32], strides = [1, 1]} : vector<2x128xf32> to vector<2x32xf32>
    %77 = arith.negf %76 : vector<2x32xf32>
    %78 = math.exp %77 : vector<2x32xf32>
    %cst_40 = arith.constant 1.000000e+00 : f32
    %79 = vector.broadcast %cst_40 : f32 to vector<2x32xf32>
    %80 = arith.addf %79, %78 : vector<2x32xf32>
    %81 = arith.divf %79, %80 : vector<2x32xf32>
    %82 = arith.mulf %73, %23 : vector<2x32xf32>
    %83 = arith.mulf %67, %75 : vector<2x32xf32>
    %84 = arith.addf %82, %83 : vector<2x32xf32>
    %85 = math.tanh %84 : vector<2x32xf32>
    %86 = arith.mulf %81, %85 : vector<2x32xf32>
    %87 = vector.broadcast %18 : vector<1x32xf32> to vector<2x32xf32>
    %88 = arith.mulf %61, %87 : vector<2x32xf32>
    %cst_41 = arith.constant dense<0.000000e+00> : vector<2xf32>
    %89 = vector.multi_reduction <add>, %88, %cst_41 [1] : vector<2x32xf32> to vector<2xf32>
    %90 = vector.shape_cast %89 : vector<2xf32> to vector<1x2xf32>
    %91 = arith.index_cast %c0_i32_30 : i32 to index
    %c0_42 = arith.constant 0 : index
    %92 = vector.load %arg9[%91, %c0_42] : memref<8x2xf32, #tpu.memory_space<vmem>>, vector<1x2xf32>
    tpu.vector_store %arg9[%91, %c0_42], %90 {strides = array<i32>} : memref<8x2xf32, #tpu.memory_space<vmem>>, vector<1x2xf32>,
    %93 = vector.broadcast %19 : vector<1x32xf32> to vector<2x32xf32>
    %94 = arith.mulf %86, %93 : vector<2x32xf32>
    %cst_43 = arith.constant dense<0.000000e+00> : vector<2xf32>
    %95 = vector.multi_reduction <add>, %94, %cst_43 [1] : vector<2x32xf32> to vector<2xf32>
    %96 = vector.shape_cast %95 : vector<2xf32> to vector<1x2xf32>
    %c7_i32_44 = arith.constant 7 : i32
    %97 = arith.subi %c7_i32_44, %c0_i32_30 : i32
    %98 = arith.index_cast %97 : i32 to index
    %c0_45 = arith.constant 0 : index
    %99 = vector.load %arg10[%98, %c0_45] : memref<8x2xf32, #tpu.memory_space<vmem>>, vector<1x2xf32>
    tpu.vector_store %arg10[%98, %c0_45], %96 {strides = array<i32>} : memref<8x2xf32, #tpu.memory_space<vmem>>, vector<1x2xf32>,
    %c1_i32 = arith.constant 1 : i32
    %100 = tpu.concatenate %61, %86 in 1 : vector<2x32xf32>, vector<2x32xf32> -> vector<2x64xf32>
    %cst_46 = arith.constant dense<0.000000e+00> : vector<2x256xf32>
    %101 = tpu.matmul %100, %17, %cst_46 {dimension_numbers = #tpu.dot_dimension_numbers<[1], [0], [0], [1], [0, 0, 1, 1], [], []>} : vector<2x64xf32>, vector<64x256xf32>, vector<2x256xf32> -> vector<2x256xf32>
    %102 = vector.extract_strided_slice %101 {offsets = [0, 0], sizes = [2, 128], strides = [1, 1]} : vector<2x256xf32> to vector<2x128xf32>
    %c2_i32_47 = arith.constant 2 : i32
    %103 = arith.muli %c1_i32, %c2_i32_47 : i32
    %104 = arith.index_cast %103 : i32 to index
    %c0_48 = arith.constant 0 : index
    %105 = vector.load %arg11[%104, %c0_48] : memref<16x128xf32, #tpu.memory_space<vmem>>, vector<2x128xf32>
    %106 = arith.addf %102, %105 : vector<2x128xf32>
    %107 = vector.extract_strided_slice %101 {offsets = [0, 128], sizes = [2, 128], strides = [1, 1]} : vector<2x256xf32> to vector<2x128xf32>
    %c7_i32_49 = arith.constant 7 : i32
    %108 = arith.subi %c7_i32_49, %c1_i32 : i32
    %c2_i32_50 = arith.constant 2 : i32
    %109 = arith.muli %108, %c2_i32_50 : i32
    %110 = arith.index_cast %109 : i32 to index
    %c0_51 = arith.constant 0 : index
    %111 = vector.load %arg12[%110, %c0_51] : memref<16x128xf32, #tpu.memory_space<vmem>>, vector<2x128xf32>
    %112 = arith.addf %107, %111 : vector<2x128xf32>
    %113 = vector.extract_strided_slice %106 {offsets = [0, 0], sizes = [2, 32], strides = [1, 1]} : vector<2x128xf32> to vector<2x32xf32>
    %114 = arith.negf %113 : vector<2x32xf32>
    %115 = math.exp %114 : vector<2x32xf32>
    %cst_52 = arith.constant 1.000000e+00 : f32
    %116 = vector.broadcast %cst_52 : f32 to vector<2x32xf32>
    %117 = arith.addf %116, %115 : vector<2x32xf32>
    %118 = arith.divf %116, %117 : vector<2x32xf32>
    %119 = vector.extract_strided_slice %106 {offsets = [0, 32], sizes = [2, 32], strides = [1, 1]} : vector<2x128xf32> to vector<2x32xf32>
    %120 = arith.negf %119 : vector<2x32xf32>
    %121 = math.exp %120 : vector<2x32xf32>
    %cst_53 = arith.constant 1.000000e+00 : f32
    %122 = vector.broadcast %cst_53 : f32 to vector<2x32xf32>
    %123 = arith.addf %122, %121 : vector<2x32xf32>
    %124 = arith.divf %122, %123 : vector<2x32xf32>
    %125 = vector.extract_strided_slice %106 {offsets = [0, 64], sizes = [2, 32], strides = [1, 1]} : vector<2x128xf32> to vector<2x32xf32>
    %126 = math.tanh %125 : vector<2x32xf32>
    %127 = vector.extract_strided_slice %106 {offsets = [0, 96], sizes = [2, 32], strides = [1, 1]} : vector<2x128xf32> to vector<2x32xf32>
    %128 = arith.negf %127 : vector<2x32xf32>
    %129 = math.exp %128 : vector<2x32xf32>
    %cst_54 = arith.constant 1.000000e+00 : f32
    %130 = vector.broadcast %cst_54 : f32 to vector<2x32xf32>
    %131 = arith.addf %130, %129 : vector<2x32xf32>
    %132 = arith.divf %130, %131 : vector<2x32xf32>
    %133 = arith.mulf %124, %59 : vector<2x32xf32>
    %134 = arith.mulf %118, %126 : vector<2x32xf32>
    %135 = arith.addf %133, %134 : vector<2x32xf32>
    %136 = math.tanh %135 : vector<2x32xf32>
    %137 = arith.mulf %132, %136 : vector<2x32xf32>
    %138 = vector.extract_strided_slice %112 {offsets = [0, 0], sizes = [2, 32], strides = [1, 1]} : vector<2x128xf32> to vector<2x32xf32>
    %139 = arith.negf %138 : vector<2x32xf32>
    %140 = math.exp %139 : vector<2x32xf32>
    %cst_55 = arith.constant 1.000000e+00 : f32
    %141 = vector.broadcast %cst_55 : f32 to vector<2x32xf32>
    %142 = arith.addf %141, %140 : vector<2x32xf32>
    %143 = arith.divf %141, %142 : vector<2x32xf32>
    %144 = vector.extract_strided_slice %112 {offsets = [0, 32], sizes = [2, 32], strides = [1, 1]} : vector<2x128xf32> to vector<2x32xf32>
    %145 = arith.negf %144 : vector<2x32xf32>
    %146 = math.exp %145 : vector<2x32xf32>
    %cst_56 = arith.constant 1.000000e+00 : f32
    %147 = vector.broadcast %cst_56 : f32 to vector<2x32xf32>
    %148 = arith.addf %147, %146 : vector<2x32xf32>
    %149 = arith.divf %147, %148 : vector<2x32xf32>
    %150 = vector.extract_strided_slice %112 {offsets = [0, 64], sizes = [2, 32], strides = [1, 1]} : vector<2x128xf32> to vector<2x32xf32>
    %151 = math.tanh %150 : vector<2x32xf32>
    %152 = vector.extract_strided_slice %112 {offsets = [0, 96], sizes = [2, 32], strides = [1, 1]} : vector<2x128xf32> to vector<2x32xf32>
    %153 = arith.negf %152 : vector<2x32xf32>
    %154 = math.exp %153 : vector<2x32xf32>
    %cst_57 = arith.constant 1.000000e+00 : f32
    %155 = vector.broadcast %cst_57 : f32 to vector<2x32xf32>
    %156 = arith.addf %155, %154 : vector<2x32xf32>
    %157 = arith.divf %155, %156 : vector<2x32xf32>
    %158 = arith.mulf %149, %84 : vector<2x32xf32>
    %159 = arith.mulf %143, %151 : vector<2x32xf32>
    %160 = arith.addf %158, %159 : vector<2x32xf32>
    %161 = math.tanh %160 : vector<2x32xf32>
    %162 = arith.mulf %157, %161 : vector<2x32xf32>
    %163 = vector.broadcast %18 : vector<1x32xf32> to vector<2x32xf32>
    %164 = arith.mulf %137, %163 : vector<2x32xf32>
    %cst_58 = arith.constant dense<0.000000e+00> : vector<2xf32>
    %165 = vector.multi_reduction <add>, %164, %cst_58 [1] : vector<2x32xf32> to vector<2xf32>
    %166 = vector.shape_cast %165 : vector<2xf32> to vector<1x2xf32>
    %167 = arith.index_cast %c1_i32 : i32 to index
    %c0_59 = arith.constant 0 : index
    %168 = vector.load %arg9[%167, %c0_59] : memref<8x2xf32, #tpu.memory_space<vmem>>, vector<1x2xf32>
    tpu.vector_store %arg9[%167, %c0_59], %166 {strides = array<i32>} : memref<8x2xf32, #tpu.memory_space<vmem>>, vector<1x2xf32>,
    %169 = vector.broadcast %19 : vector<1x32xf32> to vector<2x32xf32>
    %170 = arith.mulf %162, %169 : vector<2x32xf32>
    %cst_60 = arith.constant dense<0.000000e+00> : vector<2xf32>
    %171 = vector.multi_reduction <add>, %170, %cst_60 [1] : vector<2x32xf32> to vector<2xf32>
    %172 = vector.shape_cast %171 : vector<2xf32> to vector<1x2xf32>
    %c7_i32_61 = arith.constant 7 : i32
    %173 = arith.subi %c7_i32_61, %c1_i32 : i32
    %174 = arith.index_cast %173 : i32 to index
    %c0_62 = arith.constant 0 : index
    %175 = vector.load %arg10[%174, %c0_62] : memref<8x2xf32, #tpu.memory_space<vmem>>, vector<1x2xf32>
    tpu.vector_store %arg10[%174, %c0_62], %172 {strides = array<i32>} : memref<8x2xf32, #tpu.memory_space<vmem>>, vector<1x2xf32>,
    %c2_i32_63 = arith.constant 2 : i32
    %176 = tpu.concatenate %137, %162 in 1 : vector<2x32xf32>, vector<2x32xf32> -> vector<2x64xf32>
    %cst_64 = arith.constant dense<0.000000e+00> : vector<2x256xf32>
    %177 = tpu.matmul %176, %17, %cst_64 {dimension_numbers = #tpu.dot_dimension_numbers<[1], [0], [0], [1], [0, 0, 1, 1], [], []>} : vector<2x64xf32>, vector<64x256xf32>, vector<2x256xf32> -> vector<2x256xf32>
    %178 = vector.extract_strided_slice %177 {offsets = [0, 0], sizes = [2, 128], strides = [1, 1]} : vector<2x256xf32> to vector<2x128xf32>
    %c2_i32_65 = arith.constant 2 : i32
    %179 = arith.muli %c2_i32_63, %c2_i32_65 : i32
    %180 = arith.index_cast %179 : i32 to index
    %c0_66 = arith.constant 0 : index
    %181 = vector.load %arg11[%180, %c0_66] : memref<16x128xf32, #tpu.memory_space<vmem>>, vector<2x128xf32>
    %182 = arith.addf %178, %181 : vector<2x128xf32>
    %183 = vector.extract_strided_slice %177 {offsets = [0, 128], sizes = [2, 128], strides = [1, 1]} : vector<2x256xf32> to vector<2x128xf32>
    %c7_i32_67 = arith.constant 7 : i32
    %184 = arith.subi %c7_i32_67, %c2_i32_63 : i32
    %c2_i32_68 = arith.constant 2 : i32
    %185 = arith.muli %184, %c2_i32_68 : i32
    %186 = arith.index_cast %185 : i32 to index
    %c0_69 = arith.constant 0 : index
    %187 = vector.load %arg12[%186, %c0_69] : memref<16x128xf32, #tpu.memory_space<vmem>>, vector<2x128xf32>
    %188 = arith.addf %183, %187 : vector<2x128xf32>
    %189 = vector.extract_strided_slice %182 {offsets = [0, 0], sizes = [2, 32], strides = [1, 1]} : vector<2x128xf32> to vector<2x32xf32>
    %190 = arith.negf %189 : vector<2x32xf32>
    %191 = math.exp %190 : vector<2x32xf32>
    %cst_70 = arith.constant 1.000000e+00 : f32
    %192 = vector.broadcast %cst_70 : f32 to vector<2x32xf32>
    %193 = arith.addf %192, %191 : vector<2x32xf32>
    %194 = arith.divf %192, %193 : vector<2x32xf32>
    %195 = vector.extract_strided_slice %182 {offsets = [0, 32], sizes = [2, 32], strides = [1, 1]} : vector<2x128xf32> to vector<2x32xf32>
    %196 = arith.negf %195 : vector<2x32xf32>
    %197 = math.exp %196 : vector<2x32xf32>
    %cst_71 = arith.constant 1.000000e+00 : f32
    %198 = vector.broadcast %cst_71 : f32 to vector<2x32xf32>
    %199 = arith.addf %198, %197 : vector<2x32xf32>
    %200 = arith.divf %198, %199 : vector<2x32xf32>
    %201 = vector.extract_strided_slice %182 {offsets = [0, 64], sizes = [2, 32], strides = [1, 1]} : vector<2x128xf32> to vector<2x32xf32>
    %202 = math.tanh %201 : vector<2x32xf32>
    %203 = vector.extract_strided_slice %182 {offsets = [0, 96], sizes = [2, 32], strides = [1, 1]} : vector<2x128xf32> to vector<2x32xf32>
    %204 = arith.negf %203 : vector<2x32xf32>
    %205 = math.exp %204 : vector<2x32xf32>
    %cst_72 = arith.constant 1.000000e+00 : f32
    %206 = vector.broadcast %cst_72 : f32 to vector<2x32xf32>
    %207 = arith.addf %206, %205 : vector<2x32xf32>
    %208 = arith.divf %206, %207 : vector<2x32xf32>
    %209 = arith.mulf %200, %135 : vector<2x32xf32>
    %210 = arith.mulf %194, %202 : vector<2x32xf32>
    %211 = arith.addf %209, %210 : vector<2x32xf32>
    %212 = math.tanh %211 : vector<2x32xf32>
    %213 = arith.mulf %208, %212 : vector<2x32xf32>
    %214 = vector.extract_strided_slice %188 {offsets = [0, 0], sizes = [2, 32], strides = [1, 1]} : vector<2x128xf32> to vector<2x32xf32>
    %215 = arith.negf %214 : vector<2x32xf32>
    %216 = math.exp %215 : vector<2x32xf32>
    %cst_73 = arith.constant 1.000000e+00 : f32
    %217 = vector.broadcast %cst_73 : f32 to vector<2x32xf32>
    %218 = arith.addf %217, %216 : vector<2x32xf32>
    %219 = arith.divf %217, %218 : vector<2x32xf32>
    %220 = vector.extract_strided_slice %188 {offsets = [0, 32], sizes = [2, 32], strides = [1, 1]} : vector<2x128xf32> to vector<2x32xf32>
    %221 = arith.negf %220 : vector<2x32xf32>
    %222 = math.exp %221 : vector<2x32xf32>
    %cst_74 = arith.constant 1.000000e+00 : f32
    %223 = vector.broadcast %cst_74 : f32 to vector<2x32xf32>
    %224 = arith.addf %223, %222 : vector<2x32xf32>
    %225 = arith.divf %223, %224 : vector<2x32xf32>
    %226 = vector.extract_strided_slice %188 {offsets = [0, 64], sizes = [2, 32], strides = [1, 1]} : vector<2x128xf32> to vector<2x32xf32>
    %227 = math.tanh %226 : vector<2x32xf32>
    %228 = vector.extract_strided_slice %188 {offsets = [0, 96], sizes = [2, 32], strides = [1, 1]} : vector<2x128xf32> to vector<2x32xf32>
    %229 = arith.negf %228 : vector<2x32xf32>
    %230 = math.exp %229 : vector<2x32xf32>
    %cst_75 = arith.constant 1.000000e+00 : f32
    %231 = vector.broadcast %cst_75 : f32 to vector<2x32xf32>
    %232 = arith.addf %231, %230 : vector<2x32xf32>
    %233 = arith.divf %231, %232 : vector<2x32xf32>
    %234 = arith.mulf %225, %160 : vector<2x32xf32>
    %235 = arith.mulf %219, %227 : vector<2x32xf32>
    %236 = arith.addf %234, %235 : vector<2x32xf32>
    %237 = math.tanh %236 : vector<2x32xf32>
    %238 = arith.mulf %233, %237 : vector<2x32xf32>
    %239 = vector.broadcast %18 : vector<1x32xf32> to vector<2x32xf32>
    %240 = arith.mulf %213, %239 : vector<2x32xf32>
    %cst_76 = arith.constant dense<0.000000e+00> : vector<2xf32>
    %241 = vector.multi_reduction <add>, %240, %cst_76 [1] : vector<2x32xf32> to vector<2xf32>
    %242 = vector.shape_cast %241 : vector<2xf32> to vector<1x2xf32>
    %243 = arith.index_cast %c2_i32_63 : i32 to index
    %c0_77 = arith.constant 0 : index
    %244 = vector.load %arg9[%243, %c0_77] : memref<8x2xf32, #tpu.memory_space<vmem>>, vector<1x2xf32>
    tpu.vector_store %arg9[%243, %c0_77], %242 {strides = array<i32>} : memref<8x2xf32, #tpu.memory_space<vmem>>, vector<1x2xf32>,
    %245 = vector.broadcast %19 : vector<1x32xf32> to vector<2x32xf32>
    %246 = arith.mulf %238, %245 : vector<2x32xf32>
    %cst_78 = arith.constant dense<0.000000e+00> : vector<2xf32>
    %247 = vector.multi_reduction <add>, %246, %cst_78 [1] : vector<2x32xf32> to vector<2xf32>
    %248 = vector.shape_cast %247 : vector<2xf32> to vector<1x2xf32>
    %c7_i32_79 = arith.constant 7 : i32
    %249 = arith.subi %c7_i32_79, %c2_i32_63 : i32
    %250 = arith.index_cast %249 : i32 to index
    %c0_80 = arith.constant 0 : index
    %251 = vector.load %arg10[%250, %c0_80] : memref<8x2xf32, #tpu.memory_space<vmem>>, vector<1x2xf32>
    tpu.vector_store %arg10[%250, %c0_80], %248 {strides = array<i32>} : memref<8x2xf32, #tpu.memory_space<vmem>>, vector<1x2xf32>,
    %c3_i32 = arith.constant 3 : i32
    %252 = tpu.concatenate %213, %238 in 1 : vector<2x32xf32>, vector<2x32xf32> -> vector<2x64xf32>
    %cst_81 = arith.constant dense<0.000000e+00> : vector<2x256xf32>
    %253 = tpu.matmul %252, %17, %cst_81 {dimension_numbers = #tpu.dot_dimension_numbers<[1], [0], [0], [1], [0, 0, 1, 1], [], []>} : vector<2x64xf32>, vector<64x256xf32>, vector<2x256xf32> -> vector<2x256xf32>
    %254 = vector.extract_strided_slice %253 {offsets = [0, 0], sizes = [2, 128], strides = [1, 1]} : vector<2x256xf32> to vector<2x128xf32>
    %c2_i32_82 = arith.constant 2 : i32
    %255 = arith.muli %c3_i32, %c2_i32_82 : i32
    %256 = arith.index_cast %255 : i32 to index
    %c0_83 = arith.constant 0 : index
    %257 = vector.load %arg11[%256, %c0_83] : memref<16x128xf32, #tpu.memory_space<vmem>>, vector<2x128xf32>
    %258 = arith.addf %254, %257 : vector<2x128xf32>
    %259 = vector.extract_strided_slice %253 {offsets = [0, 128], sizes = [2, 128], strides = [1, 1]} : vector<2x256xf32> to vector<2x128xf32>
    %c7_i32_84 = arith.constant 7 : i32
    %260 = arith.subi %c7_i32_84, %c3_i32 : i32
    %c2_i32_85 = arith.constant 2 : i32
    %261 = arith.muli %260, %c2_i32_85 : i32
    %262 = arith.index_cast %261 : i32 to index
    %c0_86 = arith.constant 0 : index
    %263 = vector.load %arg12[%262, %c0_86] : memref<16x128xf32, #tpu.memory_space<vmem>>, vector<2x128xf32>
    %264 = arith.addf %259, %263 : vector<2x128xf32>
    %265 = vector.extract_strided_slice %258 {offsets = [0, 0], sizes = [2, 32], strides = [1, 1]} : vector<2x128xf32> to vector<2x32xf32>
    %266 = arith.negf %265 : vector<2x32xf32>
    %267 = math.exp %266 : vector<2x32xf32>
    %cst_87 = arith.constant 1.000000e+00 : f32
    %268 = vector.broadcast %cst_87 : f32 to vector<2x32xf32>
    %269 = arith.addf %268, %267 : vector<2x32xf32>
    %270 = arith.divf %268, %269 : vector<2x32xf32>
    %271 = vector.extract_strided_slice %258 {offsets = [0, 32], sizes = [2, 32], strides = [1, 1]} : vector<2x128xf32> to vector<2x32xf32>
    %272 = arith.negf %271 : vector<2x32xf32>
    %273 = math.exp %272 : vector<2x32xf32>
    %cst_88 = arith.constant 1.000000e+00 : f32
    %274 = vector.broadcast %cst_88 : f32 to vector<2x32xf32>
    %275 = arith.addf %274, %273 : vector<2x32xf32>
    %276 = arith.divf %274, %275 : vector<2x32xf32>
    %277 = vector.extract_strided_slice %258 {offsets = [0, 64], sizes = [2, 32], strides = [1, 1]} : vector<2x128xf32> to vector<2x32xf32>
    %278 = math.tanh %277 : vector<2x32xf32>
    %279 = vector.extract_strided_slice %258 {offsets = [0, 96], sizes = [2, 32], strides = [1, 1]} : vector<2x128xf32> to vector<2x32xf32>
    %280 = arith.negf %279 : vector<2x32xf32>
    %281 = math.exp %280 : vector<2x32xf32>
    %cst_89 = arith.constant 1.000000e+00 : f32
    %282 = vector.broadcast %cst_89 : f32 to vector<2x32xf32>
    %283 = arith.addf %282, %281 : vector<2x32xf32>
    %284 = arith.divf %282, %283 : vector<2x32xf32>
    %285 = arith.mulf %276, %211 : vector<2x32xf32>
    %286 = arith.mulf %270, %278 : vector<2x32xf32>
    %287 = arith.addf %285, %286 : vector<2x32xf32>
    %288 = math.tanh %287 : vector<2x32xf32>
    %289 = arith.mulf %284, %288 : vector<2x32xf32>
    %290 = vector.extract_strided_slice %264 {offsets = [0, 0], sizes = [2, 32], strides = [1, 1]} : vector<2x128xf32> to vector<2x32xf32>
    %291 = arith.negf %290 : vector<2x32xf32>
    %292 = math.exp %291 : vector<2x32xf32>
    %cst_90 = arith.constant 1.000000e+00 : f32
    %293 = vector.broadcast %cst_90 : f32 to vector<2x32xf32>
    %294 = arith.addf %293, %292 : vector<2x32xf32>
    %295 = arith.divf %293, %294 : vector<2x32xf32>
    %296 = vector.extract_strided_slice %264 {offsets = [0, 32], sizes = [2, 32], strides = [1, 1]} : vector<2x128xf32> to vector<2x32xf32>
    %297 = arith.negf %296 : vector<2x32xf32>
    %298 = math.exp %297 : vector<2x32xf32>
    %cst_91 = arith.constant 1.000000e+00 : f32
    %299 = vector.broadcast %cst_91 : f32 to vector<2x32xf32>
    %300 = arith.addf %299, %298 : vector<2x32xf32>
    %301 = arith.divf %299, %300 : vector<2x32xf32>
    %302 = vector.extract_strided_slice %264 {offsets = [0, 64], sizes = [2, 32], strides = [1, 1]} : vector<2x128xf32> to vector<2x32xf32>
    %303 = math.tanh %302 : vector<2x32xf32>
    %304 = vector.extract_strided_slice %264 {offsets = [0, 96], sizes = [2, 32], strides = [1, 1]} : vector<2x128xf32> to vector<2x32xf32>
    %305 = arith.negf %304 : vector<2x32xf32>
    %306 = math.exp %305 : vector<2x32xf32>
    %cst_92 = arith.constant 1.000000e+00 : f32
    %307 = vector.broadcast %cst_92 : f32 to vector<2x32xf32>
    %308 = arith.addf %307, %306 : vector<2x32xf32>
    %309 = arith.divf %307, %308 : vector<2x32xf32>
    %310 = arith.mulf %301, %236 : vector<2x32xf32>
    %311 = arith.mulf %295, %303 : vector<2x32xf32>
    %312 = arith.addf %310, %311 : vector<2x32xf32>
    %313 = math.tanh %312 : vector<2x32xf32>
    %314 = arith.mulf %309, %313 : vector<2x32xf32>
    %315 = vector.broadcast %18 : vector<1x32xf32> to vector<2x32xf32>
    %316 = arith.mulf %289, %315 : vector<2x32xf32>
    %cst_93 = arith.constant dense<0.000000e+00> : vector<2xf32>
    %317 = vector.multi_reduction <add>, %316, %cst_93 [1] : vector<2x32xf32> to vector<2xf32>
    %318 = vector.shape_cast %317 : vector<2xf32> to vector<1x2xf32>
    %319 = arith.index_cast %c3_i32 : i32 to index
    %c0_94 = arith.constant 0 : index
    %320 = vector.load %arg9[%319, %c0_94] : memref<8x2xf32, #tpu.memory_space<vmem>>, vector<1x2xf32>
    tpu.vector_store %arg9[%319, %c0_94], %318 {strides = array<i32>} : memref<8x2xf32, #tpu.memory_space<vmem>>, vector<1x2xf32>,
    %321 = vector.broadcast %19 : vector<1x32xf32> to vector<2x32xf32>
    %322 = arith.mulf %314, %321 : vector<2x32xf32>
    %cst_95 = arith.constant dense<0.000000e+00> : vector<2xf32>
    %323 = vector.multi_reduction <add>, %322, %cst_95 [1] : vector<2x32xf32> to vector<2xf32>
    %324 = vector.shape_cast %323 : vector<2xf32> to vector<1x2xf32>
    %c7_i32_96 = arith.constant 7 : i32
    %325 = arith.subi %c7_i32_96, %c3_i32 : i32
    %326 = arith.index_cast %325 : i32 to index
    %c0_97 = arith.constant 0 : index
    %327 = vector.load %arg10[%326, %c0_97] : memref<8x2xf32, #tpu.memory_space<vmem>>, vector<1x2xf32>
    tpu.vector_store %arg10[%326, %c0_97], %324 {strides = array<i32>} : memref<8x2xf32, #tpu.memory_space<vmem>>, vector<1x2xf32>,
    %c4_i32 = arith.constant 4 : i32
    %328 = tpu.concatenate %289, %314 in 1 : vector<2x32xf32>, vector<2x32xf32> -> vector<2x64xf32>
    %cst_98 = arith.constant dense<0.000000e+00> : vector<2x256xf32>
    %329 = tpu.matmul %328, %17, %cst_98 {dimension_numbers = #tpu.dot_dimension_numbers<[1], [0], [0], [1], [0, 0, 1, 1], [], []>} : vector<2x64xf32>, vector<64x256xf32>, vector<2x256xf32> -> vector<2x256xf32>
    %330 = vector.extract_strided_slice %329 {offsets = [0, 0], sizes = [2, 128], strides = [1, 1]} : vector<2x256xf32> to vector<2x128xf32>
    %c2_i32_99 = arith.constant 2 : i32
    %331 = arith.muli %c4_i32, %c2_i32_99 : i32
    %332 = arith.index_cast %331 : i32 to index
    %c0_100 = arith.constant 0 : index
    %333 = vector.load %arg11[%332, %c0_100] : memref<16x128xf32, #tpu.memory_space<vmem>>, vector<2x128xf32>
    %334 = arith.addf %330, %333 : vector<2x128xf32>
    %335 = vector.extract_strided_slice %329 {offsets = [0, 128], sizes = [2, 128], strides = [1, 1]} : vector<2x256xf32> to vector<2x128xf32>
    %c7_i32_101 = arith.constant 7 : i32
    %336 = arith.subi %c7_i32_101, %c4_i32 : i32
    %c2_i32_102 = arith.constant 2 : i32
    %337 = arith.muli %336, %c2_i32_102 : i32
    %338 = arith.index_cast %337 : i32 to index
    %c0_103 = arith.constant 0 : index
    %339 = vector.load %arg12[%338, %c0_103] : memref<16x128xf32, #tpu.memory_space<vmem>>, vector<2x128xf32>
    %340 = arith.addf %335, %339 : vector<2x128xf32>
    %341 = vector.extract_strided_slice %334 {offsets = [0, 0], sizes = [2, 32], strides = [1, 1]} : vector<2x128xf32> to vector<2x32xf32>
    %342 = arith.negf %341 : vector<2x32xf32>
    %343 = math.exp %342 : vector<2x32xf32>
    %cst_104 = arith.constant 1.000000e+00 : f32
    %344 = vector.broadcast %cst_104 : f32 to vector<2x32xf32>
    %345 = arith.addf %344, %343 : vector<2x32xf32>
    %346 = arith.divf %344, %345 : vector<2x32xf32>
    %347 = vector.extract_strided_slice %334 {offsets = [0, 32], sizes = [2, 32], strides = [1, 1]} : vector<2x128xf32> to vector<2x32xf32>
    %348 = arith.negf %347 : vector<2x32xf32>
    %349 = math.exp %348 : vector<2x32xf32>
    %cst_105 = arith.constant 1.000000e+00 : f32
    %350 = vector.broadcast %cst_105 : f32 to vector<2x32xf32>
    %351 = arith.addf %350, %349 : vector<2x32xf32>
    %352 = arith.divf %350, %351 : vector<2x32xf32>
    %353 = vector.extract_strided_slice %334 {offsets = [0, 64], sizes = [2, 32], strides = [1, 1]} : vector<2x128xf32> to vector<2x32xf32>
    %354 = math.tanh %353 : vector<2x32xf32>
    %355 = vector.extract_strided_slice %334 {offsets = [0, 96], sizes = [2, 32], strides = [1, 1]} : vector<2x128xf32> to vector<2x32xf32>
    %356 = arith.negf %355 : vector<2x32xf32>
    %357 = math.exp %356 : vector<2x32xf32>
    %cst_106 = arith.constant 1.000000e+00 : f32
    %358 = vector.broadcast %cst_106 : f32 to vector<2x32xf32>
    %359 = arith.addf %358, %357 : vector<2x32xf32>
    %360 = arith.divf %358, %359 : vector<2x32xf32>
    %361 = arith.mulf %352, %287 : vector<2x32xf32>
    %362 = arith.mulf %346, %354 : vector<2x32xf32>
    %363 = arith.addf %361, %362 : vector<2x32xf32>
    %364 = math.tanh %363 : vector<2x32xf32>
    %365 = arith.mulf %360, %364 : vector<2x32xf32>
    %366 = vector.extract_strided_slice %340 {offsets = [0, 0], sizes = [2, 32], strides = [1, 1]} : vector<2x128xf32> to vector<2x32xf32>
    %367 = arith.negf %366 : vector<2x32xf32>
    %368 = math.exp %367 : vector<2x32xf32>
    %cst_107 = arith.constant 1.000000e+00 : f32
    %369 = vector.broadcast %cst_107 : f32 to vector<2x32xf32>
    %370 = arith.addf %369, %368 : vector<2x32xf32>
    %371 = arith.divf %369, %370 : vector<2x32xf32>
    %372 = vector.extract_strided_slice %340 {offsets = [0, 32], sizes = [2, 32], strides = [1, 1]} : vector<2x128xf32> to vector<2x32xf32>
    %373 = arith.negf %372 : vector<2x32xf32>
    %374 = math.exp %373 : vector<2x32xf32>
    %cst_108 = arith.constant 1.000000e+00 : f32
    %375 = vector.broadcast %cst_108 : f32 to vector<2x32xf32>
    %376 = arith.addf %375, %374 : vector<2x32xf32>
    %377 = arith.divf %375, %376 : vector<2x32xf32>
    %378 = vector.extract_strided_slice %340 {offsets = [0, 64], sizes = [2, 32], strides = [1, 1]} : vector<2x128xf32> to vector<2x32xf32>
    %379 = math.tanh %378 : vector<2x32xf32>
    %380 = vector.extract_strided_slice %340 {offsets = [0, 96], sizes = [2, 32], strides = [1, 1]} : vector<2x128xf32> to vector<2x32xf32>
    %381 = arith.negf %380 : vector<2x32xf32>
    %382 = math.exp %381 : vector<2x32xf32>
    %cst_109 = arith.constant 1.000000e+00 : f32
    %383 = vector.broadcast %cst_109 : f32 to vector<2x32xf32>
    %384 = arith.addf %383, %382 : vector<2x32xf32>
    %385 = arith.divf %383, %384 : vector<2x32xf32>
    %386 = arith.mulf %377, %312 : vector<2x32xf32>
    %387 = arith.mulf %371, %379 : vector<2x32xf32>
    %388 = arith.addf %386, %387 : vector<2x32xf32>
    %389 = math.tanh %388 : vector<2x32xf32>
    %390 = arith.mulf %385, %389 : vector<2x32xf32>
    %391 = vector.broadcast %18 : vector<1x32xf32> to vector<2x32xf32>
    %392 = arith.mulf %365, %391 : vector<2x32xf32>
    %cst_110 = arith.constant dense<0.000000e+00> : vector<2xf32>
    %393 = vector.multi_reduction <add>, %392, %cst_110 [1] : vector<2x32xf32> to vector<2xf32>
    %394 = vector.shape_cast %393 : vector<2xf32> to vector<1x2xf32>
    %395 = arith.index_cast %c4_i32 : i32 to index
    %c0_111 = arith.constant 0 : index
    %396 = vector.load %arg9[%395, %c0_111] : memref<8x2xf32, #tpu.memory_space<vmem>>, vector<1x2xf32>
    tpu.vector_store %arg9[%395, %c0_111], %394 {strides = array<i32>} : memref<8x2xf32, #tpu.memory_space<vmem>>, vector<1x2xf32>,
    %397 = vector.broadcast %19 : vector<1x32xf32> to vector<2x32xf32>
    %398 = arith.mulf %390, %397 : vector<2x32xf32>
    %cst_112 = arith.constant dense<0.000000e+00> : vector<2xf32>
    %399 = vector.multi_reduction <add>, %398, %cst_112 [1] : vector<2x32xf32> to vector<2xf32>
    %400 = vector.shape_cast %399 : vector<2xf32> to vector<1x2xf32>
    %c7_i32_113 = arith.constant 7 : i32
    %401 = arith.subi %c7_i32_113, %c4_i32 : i32
    %402 = arith.index_cast %401 : i32 to index
    %c0_114 = arith.constant 0 : index
    %403 = vector.load %arg10[%402, %c0_114] : memref<8x2xf32, #tpu.memory_space<vmem>>, vector<1x2xf32>
    tpu.vector_store %arg10[%402, %c0_114], %400 {strides = array<i32>} : memref<8x2xf32, #tpu.memory_space<vmem>>, vector<1x2xf32>,
    %c5_i32 = arith.constant 5 : i32
    %404 = tpu.concatenate %365, %390 in 1 : vector<2x32xf32>, vector<2x32xf32> -> vector<2x64xf32>
    %cst_115 = arith.constant dense<0.000000e+00> : vector<2x256xf32>
    %405 = tpu.matmul %404, %17, %cst_115 {dimension_numbers = #tpu.dot_dimension_numbers<[1], [0], [0], [1], [0, 0, 1, 1], [], []>} : vector<2x64xf32>, vector<64x256xf32>, vector<2x256xf32> -> vector<2x256xf32>
    %406 = vector.extract_strided_slice %405 {offsets = [0, 0], sizes = [2, 128], strides = [1, 1]} : vector<2x256xf32> to vector<2x128xf32>
    %c2_i32_116 = arith.constant 2 : i32
    %407 = arith.muli %c5_i32, %c2_i32_116 : i32
    %408 = arith.index_cast %407 : i32 to index
    %c0_117 = arith.constant 0 : index
    %409 = vector.load %arg11[%408, %c0_117] : memref<16x128xf32, #tpu.memory_space<vmem>>, vector<2x128xf32>
    %410 = arith.addf %406, %409 : vector<2x128xf32>
    %411 = vector.extract_strided_slice %405 {offsets = [0, 128], sizes = [2, 128], strides = [1, 1]} : vector<2x256xf32> to vector<2x128xf32>
    %c7_i32_118 = arith.constant 7 : i32
    %412 = arith.subi %c7_i32_118, %c5_i32 : i32
    %c2_i32_119 = arith.constant 2 : i32
    %413 = arith.muli %412, %c2_i32_119 : i32
    %414 = arith.index_cast %413 : i32 to index
    %c0_120 = arith.constant 0 : index
    %415 = vector.load %arg12[%414, %c0_120] : memref<16x128xf32, #tpu.memory_space<vmem>>, vector<2x128xf32>
    %416 = arith.addf %411, %415 : vector<2x128xf32>
    %417 = vector.extract_strided_slice %410 {offsets = [0, 0], sizes = [2, 32], strides = [1, 1]} : vector<2x128xf32> to vector<2x32xf32>
    %418 = arith.negf %417 : vector<2x32xf32>
    %419 = math.exp %418 : vector<2x32xf32>
    %cst_121 = arith.constant 1.000000e+00 : f32
    %420 = vector.broadcast %cst_121 : f32 to vector<2x32xf32>
    %421 = arith.addf %420, %419 : vector<2x32xf32>
    %422 = arith.divf %420, %421 : vector<2x32xf32>
    %423 = vector.extract_strided_slice %410 {offsets = [0, 32], sizes = [2, 32], strides = [1, 1]} : vector<2x128xf32> to vector<2x32xf32>
    %424 = arith.negf %423 : vector<2x32xf32>
    %425 = math.exp %424 : vector<2x32xf32>
    %cst_122 = arith.constant 1.000000e+00 : f32
    %426 = vector.broadcast %cst_122 : f32 to vector<2x32xf32>
    %427 = arith.addf %426, %425 : vector<2x32xf32>
    %428 = arith.divf %426, %427 : vector<2x32xf32>
    %429 = vector.extract_strided_slice %410 {offsets = [0, 64], sizes = [2, 32], strides = [1, 1]} : vector<2x128xf32> to vector<2x32xf32>
    %430 = math.tanh %429 : vector<2x32xf32>
    %431 = vector.extract_strided_slice %410 {offsets = [0, 96], sizes = [2, 32], strides = [1, 1]} : vector<2x128xf32> to vector<2x32xf32>
    %432 = arith.negf %431 : vector<2x32xf32>
    %433 = math.exp %432 : vector<2x32xf32>
    %cst_123 = arith.constant 1.000000e+00 : f32
    %434 = vector.broadcast %cst_123 : f32 to vector<2x32xf32>
    %435 = arith.addf %434, %433 : vector<2x32xf32>
    %436 = arith.divf %434, %435 : vector<2x32xf32>
    %437 = arith.mulf %428, %363 : vector<2x32xf32>
    %438 = arith.mulf %422, %430 : vector<2x32xf32>
    %439 = arith.addf %437, %438 : vector<2x32xf32>
    %440 = math.tanh %439 : vector<2x32xf32>
    %441 = arith.mulf %436, %440 : vector<2x32xf32>
    %442 = vector.extract_strided_slice %416 {offsets = [0, 0], sizes = [2, 32], strides = [1, 1]} : vector<2x128xf32> to vector<2x32xf32>
    %443 = arith.negf %442 : vector<2x32xf32>
    %444 = math.exp %443 : vector<2x32xf32>
    %cst_124 = arith.constant 1.000000e+00 : f32
    %445 = vector.broadcast %cst_124 : f32 to vector<2x32xf32>
    %446 = arith.addf %445, %444 : vector<2x32xf32>
    %447 = arith.divf %445, %446 : vector<2x32xf32>
    %448 = vector.extract_strided_slice %416 {offsets = [0, 32], sizes = [2, 32], strides = [1, 1]} : vector<2x128xf32> to vector<2x32xf32>
    %449 = arith.negf %448 : vector<2x32xf32>
    %450 = math.exp %449 : vector<2x32xf32>
    %cst_125 = arith.constant 1.000000e+00 : f32
    %451 = vector.broadcast %cst_125 : f32 to vector<2x32xf32>
    %452 = arith.addf %451, %450 : vector<2x32xf32>
    %453 = arith.divf %451, %452 : vector<2x32xf32>
    %454 = vector.extract_strided_slice %416 {offsets = [0, 64], sizes = [2, 32], strides = [1, 1]} : vector<2x128xf32> to vector<2x32xf32>
    %455 = math.tanh %454 : vector<2x32xf32>
    %456 = vector.extract_strided_slice %416 {offsets = [0, 96], sizes = [2, 32], strides = [1, 1]} : vector<2x128xf32> to vector<2x32xf32>
    %457 = arith.negf %456 : vector<2x32xf32>
    %458 = math.exp %457 : vector<2x32xf32>
    %cst_126 = arith.constant 1.000000e+00 : f32
    %459 = vector.broadcast %cst_126 : f32 to vector<2x32xf32>
    %460 = arith.addf %459, %458 : vector<2x32xf32>
    %461 = arith.divf %459, %460 : vector<2x32xf32>
    %462 = arith.mulf %453, %388 : vector<2x32xf32>
    %463 = arith.mulf %447, %455 : vector<2x32xf32>
    %464 = arith.addf %462, %463 : vector<2x32xf32>
    %465 = math.tanh %464 : vector<2x32xf32>
    %466 = arith.mulf %461, %465 : vector<2x32xf32>
    %467 = vector.broadcast %18 : vector<1x32xf32> to vector<2x32xf32>
    %468 = arith.mulf %441, %467 : vector<2x32xf32>
    %cst_127 = arith.constant dense<0.000000e+00> : vector<2xf32>
    %469 = vector.multi_reduction <add>, %468, %cst_127 [1] : vector<2x32xf32> to vector<2xf32>
    %470 = vector.shape_cast %469 : vector<2xf32> to vector<1x2xf32>
    %471 = arith.index_cast %c5_i32 : i32 to index
    %c0_128 = arith.constant 0 : index
    %472 = vector.load %arg9[%471, %c0_128] : memref<8x2xf32, #tpu.memory_space<vmem>>, vector<1x2xf32>
    tpu.vector_store %arg9[%471, %c0_128], %470 {strides = array<i32>} : memref<8x2xf32, #tpu.memory_space<vmem>>, vector<1x2xf32>,
    %473 = vector.broadcast %19 : vector<1x32xf32> to vector<2x32xf32>
    %474 = arith.mulf %466, %473 : vector<2x32xf32>
    %cst_129 = arith.constant dense<0.000000e+00> : vector<2xf32>
    %475 = vector.multi_reduction <add>, %474, %cst_129 [1] : vector<2x32xf32> to vector<2xf32>
    %476 = vector.shape_cast %475 : vector<2xf32> to vector<1x2xf32>
    %c7_i32_130 = arith.constant 7 : i32
    %477 = arith.subi %c7_i32_130, %c5_i32 : i32
    %478 = arith.index_cast %477 : i32 to index
    %c0_131 = arith.constant 0 : index
    %479 = vector.load %arg10[%478, %c0_131] : memref<8x2xf32, #tpu.memory_space<vmem>>, vector<1x2xf32>
    tpu.vector_store %arg10[%478, %c0_131], %476 {strides = array<i32>} : memref<8x2xf32, #tpu.memory_space<vmem>>, vector<1x2xf32>,
    %c6_i32 = arith.constant 6 : i32
    %480 = tpu.concatenate %441, %466 in 1 : vector<2x32xf32>, vector<2x32xf32> -> vector<2x64xf32>
    %cst_132 = arith.constant dense<0.000000e+00> : vector<2x256xf32>
    %481 = tpu.matmul %480, %17, %cst_132 {dimension_numbers = #tpu.dot_dimension_numbers<[1], [0], [0], [1], [0, 0, 1, 1], [], []>} : vector<2x64xf32>, vector<64x256xf32>, vector<2x256xf32> -> vector<2x256xf32>
    %482 = vector.extract_strided_slice %481 {offsets = [0, 0], sizes = [2, 128], strides = [1, 1]} : vector<2x256xf32> to vector<2x128xf32>
    %c2_i32_133 = arith.constant 2 : i32
    %483 = arith.muli %c6_i32, %c2_i32_133 : i32
    %484 = arith.index_cast %483 : i32 to index
    %c0_134 = arith.constant 0 : index
    %485 = vector.load %arg11[%484, %c0_134] : memref<16x128xf32, #tpu.memory_space<vmem>>, vector<2x128xf32>
    %486 = arith.addf %482, %485 : vector<2x128xf32>
    %487 = vector.extract_strided_slice %481 {offsets = [0, 128], sizes = [2, 128], strides = [1, 1]} : vector<2x256xf32> to vector<2x128xf32>
    %c7_i32_135 = arith.constant 7 : i32
    %488 = arith.subi %c7_i32_135, %c6_i32 : i32
    %c2_i32_136 = arith.constant 2 : i32
    %489 = arith.muli %488, %c2_i32_136 : i32
    %490 = arith.index_cast %489 : i32 to index
    %c0_137 = arith.constant 0 : index
    %491 = vector.load %arg12[%490, %c0_137] : memref<16x128xf32, #tpu.memory_space<vmem>>, vector<2x128xf32>
    %492 = arith.addf %487, %491 : vector<2x128xf32>
    %493 = vector.extract_strided_slice %486 {offsets = [0, 0], sizes = [2, 32], strides = [1, 1]} : vector<2x128xf32> to vector<2x32xf32>
    %494 = arith.negf %493 : vector<2x32xf32>
    %495 = math.exp %494 : vector<2x32xf32>
    %cst_138 = arith.constant 1.000000e+00 : f32
    %496 = vector.broadcast %cst_138 : f32 to vector<2x32xf32>
    %497 = arith.addf %496, %495 : vector<2x32xf32>
    %498 = arith.divf %496, %497 : vector<2x32xf32>
    %499 = vector.extract_strided_slice %486 {offsets = [0, 32], sizes = [2, 32], strides = [1, 1]} : vector<2x128xf32> to vector<2x32xf32>
    %500 = arith.negf %499 : vector<2x32xf32>
    %501 = math.exp %500 : vector<2x32xf32>
    %cst_139 = arith.constant 1.000000e+00 : f32
    %502 = vector.broadcast %cst_139 : f32 to vector<2x32xf32>
    %503 = arith.addf %502, %501 : vector<2x32xf32>
    %504 = arith.divf %502, %503 : vector<2x32xf32>
    %505 = vector.extract_strided_slice %486 {offsets = [0, 64], sizes = [2, 32], strides = [1, 1]} : vector<2x128xf32> to vector<2x32xf32>
    %506 = math.tanh %505 : vector<2x32xf32>
    %507 = vector.extract_strided_slice %486 {offsets = [0, 96], sizes = [2, 32], strides = [1, 1]} : vector<2x128xf32> to vector<2x32xf32>
    %508 = arith.negf %507 : vector<2x32xf32>
    %509 = math.exp %508 : vector<2x32xf32>
    %cst_140 = arith.constant 1.000000e+00 : f32
    %510 = vector.broadcast %cst_140 : f32 to vector<2x32xf32>
    %511 = arith.addf %510, %509 : vector<2x32xf32>
    %512 = arith.divf %510, %511 : vector<2x32xf32>
    %513 = arith.mulf %504, %439 : vector<2x32xf32>
    %514 = arith.mulf %498, %506 : vector<2x32xf32>
    %515 = arith.addf %513, %514 : vector<2x32xf32>
    %516 = math.tanh %515 : vector<2x32xf32>
    %517 = arith.mulf %512, %516 : vector<2x32xf32>
    %518 = vector.extract_strided_slice %492 {offsets = [0, 0], sizes = [2, 32], strides = [1, 1]} : vector<2x128xf32> to vector<2x32xf32>
    %519 = arith.negf %518 : vector<2x32xf32>
    %520 = math.exp %519 : vector<2x32xf32>
    %cst_141 = arith.constant 1.000000e+00 : f32
    %521 = vector.broadcast %cst_141 : f32 to vector<2x32xf32>
    %522 = arith.addf %521, %520 : vector<2x32xf32>
    %523 = arith.divf %521, %522 : vector<2x32xf32>
    %524 = vector.extract_strided_slice %492 {offsets = [0, 32], sizes = [2, 32], strides = [1, 1]} : vector<2x128xf32> to vector<2x32xf32>
    %525 = arith.negf %524 : vector<2x32xf32>
    %526 = math.exp %525 : vector<2x32xf32>
    %cst_142 = arith.constant 1.000000e+00 : f32
    %527 = vector.broadcast %cst_142 : f32 to vector<2x32xf32>
    %528 = arith.addf %527, %526 : vector<2x32xf32>
    %529 = arith.divf %527, %528 : vector<2x32xf32>
    %530 = vector.extract_strided_slice %492 {offsets = [0, 64], sizes = [2, 32], strides = [1, 1]} : vector<2x128xf32> to vector<2x32xf32>
    %531 = math.tanh %530 : vector<2x32xf32>
    %532 = vector.extract_strided_slice %492 {offsets = [0, 96], sizes = [2, 32], strides = [1, 1]} : vector<2x128xf32> to vector<2x32xf32>
    %533 = arith.negf %532 : vector<2x32xf32>
    %534 = math.exp %533 : vector<2x32xf32>
    %cst_143 = arith.constant 1.000000e+00 : f32
    %535 = vector.broadcast %cst_143 : f32 to vector<2x32xf32>
    %536 = arith.addf %535, %534 : vector<2x32xf32>
    %537 = arith.divf %535, %536 : vector<2x32xf32>
    %538 = arith.mulf %529, %464 : vector<2x32xf32>
    %539 = arith.mulf %523, %531 : vector<2x32xf32>
    %540 = arith.addf %538, %539 : vector<2x32xf32>
    %541 = math.tanh %540 : vector<2x32xf32>
    %542 = arith.mulf %537, %541 : vector<2x32xf32>
    %543 = vector.broadcast %18 : vector<1x32xf32> to vector<2x32xf32>
    %544 = arith.mulf %517, %543 : vector<2x32xf32>
    %cst_144 = arith.constant dense<0.000000e+00> : vector<2xf32>
    %545 = vector.multi_reduction <add>, %544, %cst_144 [1] : vector<2x32xf32> to vector<2xf32>
    %546 = vector.shape_cast %545 : vector<2xf32> to vector<1x2xf32>
    %547 = arith.index_cast %c6_i32 : i32 to index
    %c0_145 = arith.constant 0 : index
    %548 = vector.load %arg9[%547, %c0_145] : memref<8x2xf32, #tpu.memory_space<vmem>>, vector<1x2xf32>
    tpu.vector_store %arg9[%547, %c0_145], %546 {strides = array<i32>} : memref<8x2xf32, #tpu.memory_space<vmem>>, vector<1x2xf32>,
    %549 = vector.broadcast %19 : vector<1x32xf32> to vector<2x32xf32>
    %550 = arith.mulf %542, %549 : vector<2x32xf32>
    %cst_146 = arith.constant dense<0.000000e+00> : vector<2xf32>
    %551 = vector.multi_reduction <add>, %550, %cst_146 [1] : vector<2x32xf32> to vector<2xf32>
    %552 = vector.shape_cast %551 : vector<2xf32> to vector<1x2xf32>
    %c7_i32_147 = arith.constant 7 : i32
    %553 = arith.subi %c7_i32_147, %c6_i32 : i32
    %554 = arith.index_cast %553 : i32 to index
    %c0_148 = arith.constant 0 : index
    %555 = vector.load %arg10[%554, %c0_148] : memref<8x2xf32, #tpu.memory_space<vmem>>, vector<1x2xf32>
    tpu.vector_store %arg10[%554, %c0_148], %552 {strides = array<i32>} : memref<8x2xf32, #tpu.memory_space<vmem>>, vector<1x2xf32>,
    %c7_i32_149 = arith.constant 7 : i32
    %556 = tpu.concatenate %517, %542 in 1 : vector<2x32xf32>, vector<2x32xf32> -> vector<2x64xf32>
    %cst_150 = arith.constant dense<0.000000e+00> : vector<2x256xf32>
    %557 = tpu.matmul %556, %17, %cst_150 {dimension_numbers = #tpu.dot_dimension_numbers<[1], [0], [0], [1], [0, 0, 1, 1], [], []>} : vector<2x64xf32>, vector<64x256xf32>, vector<2x256xf32> -> vector<2x256xf32>
    %558 = vector.extract_strided_slice %557 {offsets = [0, 0], sizes = [2, 128], strides = [1, 1]} : vector<2x256xf32> to vector<2x128xf32>
    %c2_i32_151 = arith.constant 2 : i32
    %559 = arith.muli %c7_i32_149, %c2_i32_151 : i32
    %560 = arith.index_cast %559 : i32 to index
    %c0_152 = arith.constant 0 : index
    %561 = vector.load %arg11[%560, %c0_152] : memref<16x128xf32, #tpu.memory_space<vmem>>, vector<2x128xf32>
    %562 = arith.addf %558, %561 : vector<2x128xf32>
    %563 = vector.extract_strided_slice %557 {offsets = [0, 128], sizes = [2, 128], strides = [1, 1]} : vector<2x256xf32> to vector<2x128xf32>
    %c7_i32_153 = arith.constant 7 : i32
    %564 = arith.subi %c7_i32_153, %c7_i32_149 : i32
    %c2_i32_154 = arith.constant 2 : i32
    %565 = arith.muli %564, %c2_i32_154 : i32
    %566 = arith.index_cast %565 : i32 to index
    %c0_155 = arith.constant 0 : index
    %567 = vector.load %arg12[%566, %c0_155] : memref<16x128xf32, #tpu.memory_space<vmem>>, vector<2x128xf32>
    %568 = arith.addf %563, %567 : vector<2x128xf32>
    %569 = vector.extract_strided_slice %562 {offsets = [0, 0], sizes = [2, 32], strides = [1, 1]} : vector<2x128xf32> to vector<2x32xf32>
    %570 = arith.negf %569 : vector<2x32xf32>
    %571 = math.exp %570 : vector<2x32xf32>
    %cst_156 = arith.constant 1.000000e+00 : f32
    %572 = vector.broadcast %cst_156 : f32 to vector<2x32xf32>
    %573 = arith.addf %572, %571 : vector<2x32xf32>
    %574 = arith.divf %572, %573 : vector<2x32xf32>
    %575 = vector.extract_strided_slice %562 {offsets = [0, 32], sizes = [2, 32], strides = [1, 1]} : vector<2x128xf32> to vector<2x32xf32>
    %576 = arith.negf %575 : vector<2x32xf32>
    %577 = math.exp %576 : vector<2x32xf32>
    %cst_157 = arith.constant 1.000000e+00 : f32
    %578 = vector.broadcast %cst_157 : f32 to vector<2x32xf32>
    %579 = arith.addf %578, %577 : vector<2x32xf32>
    %580 = arith.divf %578, %579 : vector<2x32xf32>
    %581 = vector.extract_strided_slice %562 {offsets = [0, 64], sizes = [2, 32], strides = [1, 1]} : vector<2x128xf32> to vector<2x32xf32>
    %582 = math.tanh %581 : vector<2x32xf32>
    %583 = vector.extract_strided_slice %562 {offsets = [0, 96], sizes = [2, 32], strides = [1, 1]} : vector<2x128xf32> to vector<2x32xf32>
    %584 = arith.negf %583 : vector<2x32xf32>
    %585 = math.exp %584 : vector<2x32xf32>
    %cst_158 = arith.constant 1.000000e+00 : f32
    %586 = vector.broadcast %cst_158 : f32 to vector<2x32xf32>
    %587 = arith.addf %586, %585 : vector<2x32xf32>
    %588 = arith.divf %586, %587 : vector<2x32xf32>
    %589 = arith.mulf %580, %515 : vector<2x32xf32>
    %590 = arith.mulf %574, %582 : vector<2x32xf32>
    %591 = arith.addf %589, %590 : vector<2x32xf32>
    %592 = math.tanh %591 : vector<2x32xf32>
    %593 = arith.mulf %588, %592 : vector<2x32xf32>
    %594 = vector.extract_strided_slice %568 {offsets = [0, 0], sizes = [2, 32], strides = [1, 1]} : vector<2x128xf32> to vector<2x32xf32>
    %595 = arith.negf %594 : vector<2x32xf32>
    %596 = math.exp %595 : vector<2x32xf32>
    %cst_159 = arith.constant 1.000000e+00 : f32
    %597 = vector.broadcast %cst_159 : f32 to vector<2x32xf32>
    %598 = arith.addf %597, %596 : vector<2x32xf32>
    %599 = arith.divf %597, %598 : vector<2x32xf32>
    %600 = vector.extract_strided_slice %568 {offsets = [0, 32], sizes = [2, 32], strides = [1, 1]} : vector<2x128xf32> to vector<2x32xf32>
    %601 = arith.negf %600 : vector<2x32xf32>
    %602 = math.exp %601 : vector<2x32xf32>
    %cst_160 = arith.constant 1.000000e+00 : f32
    %603 = vector.broadcast %cst_160 : f32 to vector<2x32xf32>
    %604 = arith.addf %603, %602 : vector<2x32xf32>
    %605 = arith.divf %603, %604 : vector<2x32xf32>
    %606 = vector.extract_strided_slice %568 {offsets = [0, 64], sizes = [2, 32], strides = [1, 1]} : vector<2x128xf32> to vector<2x32xf32>
    %607 = math.tanh %606 : vector<2x32xf32>
    %608 = vector.extract_strided_slice %568 {offsets = [0, 96], sizes = [2, 32], strides = [1, 1]} : vector<2x128xf32> to vector<2x32xf32>
    %609 = arith.negf %608 : vector<2x32xf32>
    %610 = math.exp %609 : vector<2x32xf32>
    %cst_161 = arith.constant 1.000000e+00 : f32
    %611 = vector.broadcast %cst_161 : f32 to vector<2x32xf32>
    %612 = arith.addf %611, %610 : vector<2x32xf32>
    %613 = arith.divf %611, %612 : vector<2x32xf32>
    %614 = arith.mulf %605, %540 : vector<2x32xf32>
    %615 = arith.mulf %599, %607 : vector<2x32xf32>
    %616 = arith.addf %614, %615 : vector<2x32xf32>
    %617 = math.tanh %616 : vector<2x32xf32>
    %618 = arith.mulf %613, %617 : vector<2x32xf32>
    %619 = vector.broadcast %18 : vector<1x32xf32> to vector<2x32xf32>
    %620 = arith.mulf %593, %619 : vector<2x32xf32>
    %cst_162 = arith.constant dense<0.000000e+00> : vector<2xf32>
    %621 = vector.multi_reduction <add>, %620, %cst_162 [1] : vector<2x32xf32> to vector<2xf32>
    %622 = vector.shape_cast %621 : vector<2xf32> to vector<1x2xf32>
    %623 = arith.index_cast %c7_i32_149 : i32 to index
    %c0_163 = arith.constant 0 : index
    %624 = vector.load %arg9[%623, %c0_163] : memref<8x2xf32, #tpu.memory_space<vmem>>, vector<1x2xf32>
    tpu.vector_store %arg9[%623, %c0_163], %622 {strides = array<i32>} : memref<8x2xf32, #tpu.memory_space<vmem>>, vector<1x2xf32>,
    %625 = vector.broadcast %19 : vector<1x32xf32> to vector<2x32xf32>
    %626 = arith.mulf %618, %625 : vector<2x32xf32>
    %cst_164 = arith.constant dense<0.000000e+00> : vector<2xf32>
    %627 = vector.multi_reduction <add>, %626, %cst_164 [1] : vector<2x32xf32> to vector<2xf32>
    %628 = vector.shape_cast %627 : vector<2xf32> to vector<1x2xf32>
    %c7_i32_165 = arith.constant 7 : i32
    %629 = arith.subi %c7_i32_165, %c7_i32_149 : i32
    %630 = arith.index_cast %629 : i32 to index
    %c0_166 = arith.constant 0 : index
    %631 = vector.load %arg10[%630, %c0_166] : memref<8x2xf32, #tpu.memory_space<vmem>>, vector<1x2xf32>
    tpu.vector_store %arg10[%630, %c0_166], %628 {strides = array<i32>} : memref<8x2xf32, #tpu.memory_space<vmem>>, vector<1x2xf32>,
    %c8_i32 = arith.constant 8 : i32
    %c0_167 = arith.constant 0 : index
    %c0_168 = arith.constant 0 : index
    %632 = vector.load %arg13[%c0_167, %c0_168] : memref<2x32xf32, #tpu.memory_space<vmem>>, vector<2x32xf32>
    tpu.vector_store %arg13[%c0_167, %c0_168], %593 {strides = array<i32>} : memref<2x32xf32, #tpu.memory_space<vmem>>, vector<2x32xf32>,
    %c0_169 = arith.constant 0 : index
    %c0_170 = arith.constant 0 : index
    %633 = vector.load %arg14[%c0_169, %c0_170] : memref<2x32xf32, #tpu.memory_space<vmem>>, vector<2x32xf32>
    tpu.vector_store %arg14[%c0_169, %c0_170], %591 {strides = array<i32>} : memref<2x32xf32, #tpu.memory_space<vmem>>, vector<2x32xf32>,
    %c0_171 = arith.constant 0 : index
    %c0_172 = arith.constant 0 : index
    %634 = vector.load %arg15[%c0_171, %c0_172] : memref<2x32xf32, #tpu.memory_space<vmem>>, vector<2x32xf32>
    tpu.vector_store %arg15[%c0_171, %c0_172], %618 {strides = array<i32>} : memref<2x32xf32, #tpu.memory_space<vmem>>, vector<2x32xf32>,
    %c0_173 = arith.constant 0 : index
    %c0_174 = arith.constant 0 : index
    %635 = vector.load %arg16[%c0_173, %c0_174] : memref<2x32xf32, #tpu.memory_space<vmem>>, vector<2x32xf32>
    tpu.vector_store %arg16[%c0_173, %c0_174], %616 {strides = array<i32>} : memref<2x32xf32, #tpu.memory_space<vmem>>, vector<2x32xf32>,
    return
  }
  func.func @transform_0(%arg0: i32) -> (i32, i32) {
    %c0_i32 = arith.constant 0 : i32
    %c0_i32_0 = arith.constant 0 : i32
    return %arg0, %c0_i32 : i32, i32
  }
  func.func @transform_1(%arg0: i32) -> (i32, i32) {
    %c0_i32 = arith.constant 0 : i32
    %0 = arith.subi %c0_i32, %arg0 : i32
    %c0_i32_0 = arith.constant 0 : i32
    %c0_i32_1 = arith.constant 0 : i32
    return %0, %c0_i32_0 : i32, i32
  }
  func.func @transform_2(%arg0: i32) -> (i32, i32) {
    %c0_i32 = arith.constant 0 : i32
    %c0_i32_0 = arith.constant 0 : i32
    %c0_i32_1 = arith.constant 0 : i32
    return %c0_i32, %c0_i32_0 : i32, i32
  }
  func.func @transform_3(%arg0: i32) -> (i32, i32) {
    %c0_i32 = arith.constant 0 : i32
    %c0_i32_0 = arith.constant 0 : i32
    %c0_i32_1 = arith.constant 0 : i32
    return %c0_i32, %c0_i32_0 : i32, i32
  }
  func.func @transform_4(%arg0: i32) -> (i32, i32) {
    %c0_i32 = arith.constant 0 : i32
    %c0_i32_0 = arith.constant 0 : i32
    %c0_i32_1 = arith.constant 0 : i32
    return %c0_i32, %c0_i32_0 : i32, i32
  }
  func.func @transform_5(%arg0: i32) -> (i32, i32) {
    %c0_i32 = arith.constant 0 : i32
    %c0_i32_0 = arith.constant 0 : i32
    %c0_i32_1 = arith.constant 0 : i32
    return %c0_i32, %c0_i32_0 : i32, i32
  }
  func.func @transform_6(%arg0: i32) -> (i32, i32) {
    %c0_i32 = arith.constant 0 : i32
    %c0_i32_0 = arith.constant 0 : i32
    %c0_i32_1 = arith.constant 0 : i32
    return %c0_i32, %c0_i32_0 : i32, i32
  }
  func.func @transform_7(%arg0: i32) -> (i32, i32) {
    %c0_i32 = arith.constant 0 : i32
    %c0_i32_0 = arith.constant 0 : i32
    %c0_i32_1 = arith.constant 0 : i32
    return %c0_i32, %c0_i32_0 : i32, i32
  }
  func.func @transform_8(%arg0: i32) -> (i32, i32) {
    %c0_i32 = arith.constant 0 : i32
    %c0_i32_0 = arith.constant 0 : i32
    return %arg0, %c0_i32 : i32, i32
  }
  func.func @transform_9(%arg0: i32) -> (i32, i32) {
    %c0_i32 = arith.constant 0 : i32
    %0 = arith.subi %c0_i32, %arg0 : i32
    %c0_i32_0 = arith.constant 0 : i32
    %c0_i32_1 = arith.constant 0 : i32
    return %0, %c0_i32_0 : i32, i32
  }
}

</mosaic_0001>

<bundles_post_ra>
// kernel: tpu_custom_call.1
= control target key start
LH: loop header
LB: loop body
LE: loop exit
PB: predicated region body
PF: predicated region fallthrough
CT: control target
= control target key end

     0   :  { %15 = vsyncpa [#allocation9], 0  ;;  %s2651_s0 = inlined_call_operand.hbm [shape: f32[16,32], index: 0, kind: input, shape index: {}]   ;;  %s2652_s1 = inlined_call_operand.hbm [shape: f32[16,32], index: 1, kind: input, shape index: {}]   ;;  %s2653_s2 = inlined_call_operand.hbm [shape: f32[32,128], index: 2, kind: input, shape index: {}]   ;;  %s2654_s3 = inlined_call_operand.hbm [shape: f32[32,128], index: 3, kind: input, shape index: {}]   ;;  %s2655_s4 = inlined_call_operand.vmem [shape: f32[1,128], index: 4, kind: input, shape index: {}]   ;;  %s2656_s5 = inlined_call_operand.vmem [shape: f32[1,128], index: 5, kind: input, shape index: {}]   ;;  %s2657_s6 = inlined_call_operand.hbm [shape: f32[64,256], index: 6, kind: input, shape index: {}]   ;;  %s2658_s7 = inlined_call_operand.vmem [shape: f32[1,64], index: 7, kind: input, shape index: {}]   ;;  %s2659_s8 = inlined_call_operand.vmem [shape: f32[8,2], index: 8, kind: output, shape index: {0}]   ;;  %s2660_s9 = inlined_call_operand.vmem [shape: f32[8,2], index: 9, kind: output, shape index: {1}]  }
   0x1   :  { %16 = vsyncpa [#allocation11], 0 }
   0x2   :  { %17 = vsyncpa [#allocation14], 0  ;;  %s2043_s30 = smov [#allocation10]   ;;  %s2044_s11 = smov [#allocation13]  }
   0x3   :  { %s39_s10 = sshll.u32 %s2043_s30, 4  ;;  %s63_s12 = sshll.u32 %s2044_s11, 4  ;;  %s40_s10 = int_to_ptr.vmem [resolvable:$true] %s39_s10  ;;  %s64_s12 = int_to_ptr.vmem [resolvable:$true] %s63_s12 }
   0x4   :  { %s1945_s13 = scalar_lea.vmem %s40_s10, 256  ;;  %p1950_p1 = scmp.lt.s32.totalorder %s40_s10, %s40_s10 }
   0x5   :  { %p1946_p0 = scmp.ne.s32.totalorder %s40_s10, %s1945_s13  ;;  %p1951_p2 = scmp.lt.s32.totalorder %s1945_s13, %s1945_s13 }
   0x7   :  { %p1952_p3 = por %p1951_p2, %p1950_p1 }
   0x9   :  { %p1953_p4 = pnand %p1952_p3, %p1946_p0 }
   0xb   :  { %1956 = shalt.err (!%p1953_p4)
}
   0xc   :  { %s2045_s14 = smov 128   ;;  %s2046_s15 = smov 8  }
   0xd   :  { %45 = dma.hbm_to_vmem [thread:$0]  %s2652_s1, 256, %s40_s10, [#allocation11], %s2045_s14, %s2045_s14, %s2046_s15  }
   0xe   :  { %s1965_s18 = scalar_lea.vmem %s64_s12, 512  ;;  %p1970_p6 = scmp.lt.s32.totalorder %s64_s12, %s64_s12 }
   0xf   :  { %p1966_p5 = scmp.ne.s32.totalorder %s64_s12, %s1965_s18  ;;  %p1971_p7 = scmp.lt.s32.totalorder %s1965_s18, %s1965_s18 }
  0x11   :  { %p1972_p8 = por %p1971_p7, %p1970_p6 }
  0x13   :  { %p1973_p9 = pnand %p1972_p8, %p1966_p5 }
  0x15   :  { %1976 = shalt.err (!%p1973_p9)
}
  0x16   :  { %69 = dma.hbm_to_vmem [thread:$0]  %s2654_s3, 512, %s64_s12, [#allocation14], %s2045_s14, %s2045_s14, %s2046_s15  }
  0x17   :  { %s2047_s21 = smov [#allocation8]   ;;  %s2048_s23 = smov [#allocation12]  }
  0x18   :  { %s23_s22 = sshll.u32 %s2047_s21, 4  ;;  %s51_s24 = sshll.u32 %s2048_s23, 4  ;;  %s24_s22 = int_to_ptr.vmem [resolvable:$true] %s23_s22  ;;  %s52_s24 = int_to_ptr.vmem [resolvable:$true] %s51_s24 }
  0x19   :  { %s1985_s1 = scalar_lea.vmem %s24_s22, 256  ;;  %p1990_p11 = scmp.lt.s32.totalorder %s24_s22, %s24_s22 }
  0x1a   :  { %p1986_p10 = scmp.ne.s32.totalorder %s24_s22, %s1985_s1  ;;  %p1991_p12 = scmp.lt.s32.totalorder %s1985_s1, %s1985_s1 }
  0x1c   :  { %p1992_p13 = por %p1991_p12, %p1990_p11 }
  0x1e   :  { %p1993_p0 = pnand %p1992_p13, %p1986_p10 }
  0x20   :  { %1996 = shalt.err (!%p1993_p0)
}
  0x21   :  { %29 = dma.hbm_to_vmem [thread:$0]  %s2651_s0, 256, %s24_s22, [#allocation9], %s2045_s14, %s2045_s14, %s2046_s15  }
  0x22   :  { %s2005_s3 = scalar_lea.vmem %s52_s24, 512  ;;  %p2010_p2 = scmp.lt.s32.totalorder %s52_s24, %s52_s24 }
  0x23   :  { %p2006_p1 = scmp.ne.s32.totalorder %s52_s24, %s2005_s3  ;;  %p2011_p3 = scmp.lt.s32.totalorder %s2005_s3, %s2005_s3 }
  0x25   :  { %p2012_p4 = por %p2011_p3, %p2010_p2 }
  0x27   :  { %p2013_p5 = pnand %p2012_p4, %p2006_p1 }
  0x29   :  { %2016 = shalt.err (!%p2013_p5)
}
  0x2a   :  { %57 = dma.hbm_to_vmem [thread:$0]  %s2653_s2, 512, %s52_s24, [#allocation11], %s2045_s14, %s2045_s14, %s2046_s15  }
  0x2b   :  { %s2049_s29 = smov [#allocation15]  }
  0x2c   :  { %s79_s30 = sshll.u32 %s2049_s29, 4  ;;  %s80_s30 = int_to_ptr.vmem [resolvable:$true] %s79_s30 }
  0x2d   :  { %s2025_s10 = scalar_lea.vmem %s80_s30, 2048  ;;  %p2030_p7 = scmp.lt.s32.totalorder %s80_s30, %s80_s30 }
  0x2e   :  { %p2026_p6 = scmp.ne.s32.totalorder %s80_s30, %s2025_s10  ;;  %p2031_p8 = scmp.lt.s32.totalorder %s2025_s10, %s2025_s10 }
  0x30   :  { %p2032_p9 = por %p2031_p8, %p2030_p7 }
  0x32   :  { %p2033_p10 = pnand %p2032_p9, %p2026_p6 }
  0x34   :  { %2036 = shalt.err (!%p2033_p10)
}
  0x35   :  { %s2050_s0 = smov 256   ;;  %s2051_s11 = smov 16  }
  0x36   :  { %85 = dma.hbm_to_vmem [thread:$0]  %s2657_s6, 2048, %s80_s30, [#allocation14], %s2050_s0, %s2050_s0, %s2051_s11  }
  0x37   :  { %2037 = dma.done.wait [#allocation9], 256  }
  0x38   :  { %2038 = vsyncadd [#allocation9], 4294967040 }
  0x39   :  { %2039 = dma.done.wait [#allocation11], 768  }
  0x3a   :  { %2040 = vsyncadd [#allocation11], 4294966528 }
  0x3b   :  { %2041 = dma.done.wait [#allocation14], 2560  }
  0x3c   :  { %2042 = vsyncadd [#allocation14], 4294964736  ;;  %vm120_vm0 = vcmask 254976   ;;  %v2052_v0 = vmov 0.0   ;;  %v130_v1 = vld [vmem:[#allocation12 + $0x18] sm:$0xff]  ;;  %v129_v2 = vld [vmem:[#allocation12 + $0x10] sm:$0xff] }
  0x3d   :  { %123 = vst.msk [vmem:[#allocation6] sm:$0x3] %vm120_vm0, %v2052_v0  ;;  %121 = vst.msk [vmem:[#allocation4] sm:$0x3] %vm120_vm0, %v2052_v0  ;;  %vm138_vm1 = vcmask 261120   ;;  %1774 = vmatprep.subr.mxu0 %v130_v1  ;;  %v125_v4 = vld [vmem:[#allocation8] sm:$0xff] }
  0x3e   :  { %122 = vst.msk [vmem:[#allocation5] sm:$0x3] %vm120_vm0, %v2052_v0  ;;  %124 = vst.msk [vmem:[#allocation7] sm:$0x3] %vm120_vm0, %v2052_v0  ;;  %s2053_s2 = smov 32   ;;  %1775 = vmatpush3.msra.mxu0 %v130_v1  ;;  %v128_v5 = vld [vmem:[#allocation12 + $0x8] sm:$0xff]  ;;  %1782 = vmatprep.mubr.msk.f32.mxu0 %vm138_vm1, %v125_v4 }
  0x3f   :  { %v227_v6 = vld [vmem:[#allocation13 + $0x18] sm:$0xff]  ;;  %1776 = vmatprep.subr.mxu0 %v129_v2  ;;  %v226_v7 = vld [vmem:[#allocation13 + $0x10] sm:$0xff]  ;;  %v127_v8 = vld [vmem:[#allocation12] sm:$0xff]  ;;  %vm344_vm2 = vcmask 523264   ;;  %s2055_s18 = smov 96   ;;  %vm504_vm3 = vcmask 8192  }
  0x40   :  { %1777 = vmatpush3.msra.mxu0 %v129_v2  ;;  %1785 = vmatprep.subr.mxu1 %v227_v6  ;;  %v225_v9 = vld [vmem:[#allocation13 + $0x8] sm:$0xff]  ;;  %v2143_v11 = vld [vmem:[#allocation15 + $0x78] sm:$0xff]  ;;  %v2145_v12 = vld [vmem:[#allocation15 + $0x70] sm:$0xff] }
  0x41   :  { %1778 = vmatprep.subr.mxu0 %v128_v5  ;;  %1786 = vmatpush3.msra.mxu1 %v227_v6  ;;  %v126_v10 = vld [vmem:[#allocation8 + $0x8] sm:$0xff]  ;;  %v224_v14 = vld [vmem:[#allocation13] sm:$0xff]  ;;  %v2154_v16 = vld [vmem:[#allocation15 + $0x58] sm:$0xff] }
  0x42   :  { %1779 = vmatpush3.msra.mxu0 %v128_v5  ;;  %1787 = vmatprep.subr.mxu1 %v226_v7  ;;  %v2147_v13 = vld [vmem:[#allocation15 + $0x68] sm:$0xff]  ;;  %v2151_v15 = vld [vmem:[#allocation15 + $0x60] sm:$0xff]  ;;  %v222_v17 = vld [vmem:[#allocation10] sm:$0xff] }
  0x43   :  { %1780 = vmatprep.subr.mxu0 %v127_v8  ;;  %1788 = vmatpush3.msra.mxu1 %v226_v7  ;;  %v2157_v18 = vld [vmem:[#allocation15 + $0x50] sm:$0xff]  ;;  %v223_v19 = vld [vmem:[#allocation10 + $0x8] sm:$0xff]  ;;  %v2160_v20 = vld [vmem:[#allocation15 + $0x48] sm:$0xff] }
  0x44   :  { %v337_v3 = vld [vmem:[#allocation6] sm:$0x3]  ;;  %1781 = vmatpush3.msra.mxu0 %v127_v8  ;;  %1789 = vmatprep.subr.mxu1 %v225_v9  ;;  %v2164_v21 = vld [vmem:[#allocation15 + $0x40] sm:$0xff]  ;;  %v2171_v23 = vld [vmem:[#allocation15 + $0x30] sm:$0xff] }
  0x45   :  { %340 = vrot.lane.b32.xlu0 %v337_v3, %s2053_s2  ;;  %1783 = vmatmul.mubr.msk.f32.vlgmr.msra.gmra.mxu0 %vm138_vm1, %v126_v10  ;;  %v2168_v22 = vld [vmem:[#allocation15 + $0x38] sm:$0xff]  ;;  %v2175_v24 = vld [vmem:[#allocation15 + $0x28] sm:$0xff]  ;;  %v2179_v25 = vld [vmem:[#allocation15 + $0x20] sm:$0xff] }
  0x46   :  { %364 = vmatprep.subr.mxu0 %v2143_v11  ;;  %1790 = vmatpush3.msra.mxu1 %v225_v9  ;;  %v2183_v26 = vld [vmem:[#allocation15 + $0x18] sm:$0xff]  ;;  %v2187_v27 = vld [vmem:[#allocation15 + $0x10] sm:$0xff]  ;;  %v2191_v28 = vld [vmem:[#allocation15 + $0x8] sm:$0xff] }
  0x47   :  { %365 = vmatpush1.msra.mxu0 %v2145_v12  ;;  %1791 = vmatprep.subr.mxu1 %v224_v14  ;;  %v2195_v29 = vld [vmem:[#allocation15] sm:$0xff]  ;;  %v335_v30 = vld [vmem:[#allocation4] sm:$0x3]  ;;  %v338_v50 = vld [vmem:[#allocation7] sm:$0x3] }
  0x48   :  { %366 = vmatprep.subr.mxu0 %v2147_v13  ;;  %1792 = vmatpush3.msra.mxu1 %v224_v14  ;;  %v1731_v33 = vld [vmem:[%s2655_s4] ss:$0 sm:$0xff]  ;;  %s2054_s4 = smov 64   ;;  %v336_v52 = vld [vmem:[#allocation5] sm:$0x3] }
  0x49   :  { %367 = vmatpush1.msra.mxu0 %v2151_v15  ;;  %1793 = vmatprep.mubr.msk.f32.mxu1 %vm138_vm1, %v222_v17  ;;  %v1734_v38 = vld [vmem:[%s2656_s5] ss:$0 sm:$0xff] }
  0x4a   :  { %368 = vmatprep.subr.mxu0 %v2154_v16  ;;  %1794 = vmatmul.mubr.msk.f32.vlgmr.msra.gmra.mxu1 %vm138_vm1, %v223_v19 }
  0x4b   :  { %369 = vmatpush1.msra.mxu0 %v2157_v18  ;;  %412 = vmatprep.mubr.f32.mxu0 %v2052_v0 }
  0x4c   :  { %370 = vmatprep.subr.mxu0 %v2160_v20  ;;  %552 = vmatprep.subr.mxu1 %v2143_v11 }
  0x4d   :  { %371 = vmatpush1.msra.mxu0 %v2164_v21  ;;  %553 = vmatpush1.msra.mxu1 %v2145_v12 }
  0x4e   :  { %372 = vmatprep.subr.mxu0 %v2168_v22  ;;  %554 = vmatprep.subr.mxu1 %v2147_v13 }
  0x4f   :  { %373 = vmatpush1.msra.mxu0 %v2171_v23  ;;  %555 = vmatpush1.msra.mxu1 %v2151_v15 }
  0x50   :  { %374 = vmatprep.subr.mxu0 %v2175_v24  ;;  %556 = vmatprep.subr.mxu1 %v2154_v16 }
  0x51   :  { %375 = vmatpush1.msra.mxu0 %v2179_v25  ;;  %557 = vmatpush1.msra.mxu1 %v2157_v18 }
  0x52   :  { %376 = vmatprep.subr.mxu0 %v2183_v26  ;;  %558 = vmatprep.subr.mxu1 %v2160_v20 }
  0x53   :  { %377 = vmatpush1.msra.mxu0 %v2187_v27  ;;  %559 = vmatpush1.msra.mxu1 %v2164_v21 }
  0x54   :  { %378 = vmatprep.subr.mxu0 %v2191_v28  ;;  %560 = vmatprep.subr.mxu1 %v2168_v22 }
  0x55   :  { %379 = vmatpush1.msra.mxu0 %v2195_v29  ;;  %561 = vmatpush1.msra.mxu1 %v2171_v23 }
  0x56   :  { %600 = vmatprep.mubr.f32.mxu1 %v2052_v0  ;;  %562 = vmatprep.subr.mxu1 %v2175_v24 }
  0x57   :  { %717 = vmatprep.subr.mxu0 %v2143_v11  ;;  %563 = vmatpush1.msra.mxu1 %v2179_v25 }
  0x58   :  { %564 = vmatprep.subr.mxu1 %v2183_v26 }
  0x59   :  { %565 = vmatpush1.msra.mxu1 %v2187_v27 }
  0x5a   :  { %566 = vmatprep.subr.mxu1 %v2191_v28 }
  0x5b   :  { %567 = vmatpush1.msra.mxu1 %v2195_v29 }
  0x5c   :  { %882 = vmatprep.subr.mxu1 %v2143_v11 }
  0xb7   :  { %v341_v31 = vpop.permute.xlu0 %340 }
  0xb8   :  { %v343_v32 = vsel %vm138_vm1, %v335_v30, %v341_v31 }
  0xb9   :  { %1737 = vmatmul.mubr.msk.f32.vlgmr.msra.gmra.mxu0 %vm344_vm2, %v343_v32 }
  0xba   :  { %718 = vmatpush1.msra.mxu0 %v2145_v12  ;;  %765 = vmatprep.mubr.f32.mxu0 %v2052_v0 }
  0xbb   :  { %719 = vmatprep.subr.mxu0 %v2147_v13 }
  0xbc   :  { %720 = vmatpush1.msra.mxu0 %v2151_v15 }
  0xbd   :  { %721 = vmatprep.subr.mxu0 %v2154_v16 }
  0xbe   :  { %722 = vmatpush1.msra.mxu0 %v2157_v18 }
  0xbf   :  { %723 = vmatprep.subr.mxu0 %v2160_v20 }
  0xc0   :  { %724 = vmatpush1.msra.mxu0 %v2164_v21 }
  0xc1   :  { %725 = vmatprep.subr.mxu0 %v2168_v22 }
  0xc2   :  { %726 = vmatpush1.msra.mxu0 %v2171_v23 }
  0xc3   :  { %727 = vmatprep.subr.mxu0 %v2175_v24 }
  0xc4   :  { %728 = vmatpush1.msra.mxu0 %v2179_v25 }
  0xc5   :  { %729 = vmatprep.subr.mxu0 %v2183_v26 }
  0xc6   :  { %730 = vmatpush1.msra.mxu0 %v2187_v27 }
  0xc7   :  { %731 = vmatprep.subr.mxu0 %v2191_v28 }
  0xc8   :  { %732 = vmatpush1.msra.mxu0 %v2195_v29 }
  0xc9   :  { %1047 = vmatprep.subr.mxu0 %v2143_v11 }
 0x105   :  { %v1784_v34 = vpop.f32.mrf.mxu0 }
 0x106   :  { %v217_v35 = vadd.f32 %v1784_v34, %v1731_v33 }
 0x107   :  { %v211_v36 = vpop.f32.mrf.mxu0 }
 0x108   :  { %221 = vst [vmem:[#allocation2 + $0x8] sm:$0xff] %v217_v35  ;;  %v212_v37 = vadd.f32 %v1731_v33, %v211_v36 }
 0x10a   :  { %220 = vst [vmem:[#allocation2] sm:$0xff] %v212_v37  ;;  %v1795_v39 = vpop.f32.mrf.mxu1 }
 0x10b   :  { %v313_v40 = vadd.f32 %v1795_v39, %v1734_v38 }
 0x10c   :  { %v307_v41 = vpop.f32.mrf.mxu1 }
 0x10d   :  { %317 = vst [vmem:[#allocation3 + $0x8] sm:$0xff] %v313_v40  ;;  %v308_v42 = vadd.f32 %v1734_v38, %v307_v41 }
 0x10f   :  { %316 = vst [vmem:[#allocation3] sm:$0xff] %v308_v42 }
 0x111   :  { %v419_v44 = vld [vmem:[#allocation2] sm:$0x3]  ;;  %v607_v36 = vld [vmem:[#allocation2 + $0x2] sm:$0x3] }
 0x114   :  { %v421_v45 = vld [vmem:[#allocation3 + $0xe] sm:$0x3]  ;;  %v609_v39 = vld [vmem:[#allocation3 + $0xc] sm:$0x3] }
 0x179   :  { %v414_v43 = vpop.f32.mrf.mxu0 }
 0x17a   :  { %v420_v46 = vadd.f32 %v419_v44, %v414_v43 }
 0x17b   :  { %v416_v47 = vpop.f32.mrf.mxu0 }
 0x17c   :  { %1809 = vtanh.f32 %v420_v46  ;;  %v422_v48 = vadd.f32 %v421_v45, %v416_v47  ;;  %v1738_v53 = vmul.f32 -1.442695, %v420_v46 }
 0x17e   :  { %1811 = vtanh.f32 %v422_v48  ;;  %v1739_v54 = vmul.f32 -1.442695, %v422_v48 }
 0x17f   :  { %1813 = vpow2.f32 %v1738_v53 }
 0x180   :  { %1815 = vpow2.f32 %v1739_v54 }
 0x189   :  { %v1810_v49 = vpop.eup %1809 }
 0x18a   :  { %436 = vrot.lane.b32.xlu0 %v1810_v49, %s2054_s4 }
 0x18b   :  { %v1812_v51 = vpop.eup %1811 }
 0x18c   :  { %464 = vrot.lane.b32.xlu1 %v1812_v51, %s2054_s4  ;;  %v1814_v55 = vpop.eup %1813 }
 0x18d   :  { %v1816_v56 = vpop.eup %1815  ;;  %v426_v57 = vadd.f32 1.0, %v1814_v55 }
 0x18e   :  { %459 = vrot.lane.b32.xlu0 %v338_v50, %s2053_s2  ;;  %v454_v58 = vadd.f32 1.0, %v1816_v56 }
 0x18f   :  { %1817 = vrcp.f32 %v426_v57 }
 0x190   :  { %431 = vrot.lane.b32.xlu1 %v336_v52, %s2053_s2  ;;  %1819 = vrcp.f32 %v454_v58 }
 0x19c   :  { %v1818_v59 = vpop.eup %1817 }
 0x19d   :  { %v1820_v62 = vpop.eup %1819 }
 0x1fc   :  { %v437_v60 = vpop.permute.xlu0 %436 }
 0x1fd   :  { %v439_v61 = vmul.f32 %v1818_v59, %v437_v60 }
 0x1fe   :  { %v465_v63 = vpop.permute.xlu1 %464 }
 0x1ff   :  { %441 = vrot.lane.b32.xlu1 %v439_v61, %s2053_s2  ;;  %v467_v1 = vmul.f32 %v1820_v62, %v465_v63 }
 0x200   :  { %v460_v3 = vpop.permute.xlu0 %459 }
 0x201   :  { %469 = vrot.lane.b32.xlu0 %v467_v1, %s2053_s2  ;;  %v462_v7 = vmul.f32 %v1820_v62, %v460_v3 }
 0x202   :  { %v432_v2 = vpop.permute.xlu1 %431 }
 0x203   :  { %v434_v4 = vmul.f32 %v1818_v59, %v432_v2 }
 0x271   :  { %v442_v5 = vpop.permute.xlu1 %441 }
 0x272   :  { %v2245_v6 = vadd.f32 %v442_v5, %v434_v4 }
 0x273   :  { %v470_v8 = vpop.permute.xlu0 %469 }
 0x274   :  { %1821 = vtanh.f32 %v2245_v6  ;;  %v2248_v9 = vadd.f32 %v470_v8, %v462_v7  ;;  %v772_v8 = vld [vmem:[#allocation2 + $0x4] sm:$0x3] }
 0x276   :  { %1823 = vtanh.f32 %v2248_v9 }
 0x281   :  { %v1822_v10 = vpop.eup %1821 }
 0x282   :  { %447 = vrot.lane.b32.xlu1 %v1822_v10, %s2054_s4 }
 0x283   :  { %v1824_v14 = vpop.eup %1823 }
 0x284   :  { %475 = vrot.lane.b32.xlu0 %v1824_v14, %s2054_s4  ;;  %v774_v14 = vld [vmem:[#allocation3 + $0xa] sm:$0x3] }
 0x2f4   :  { %v448_v17 = vpop.permute.xlu1 %447 }
 0x2f5   :  { %v2253_v19 = vmul.f32 %v1818_v59, %v448_v17 }
 0x2f6   :  { %v476_v30 = vpop.permute.xlu0 %475 }
 0x2f7   :  { %525 = vrot.lane.b32.xlu1 %v2253_v19, %s2053_s2  ;;  %v2257_v31 = vmul.f32 %v1820_v62, %v476_v30 }
 0x2f9   :  { %529 = vrot.lane.b32.xlu0 %v2257_v31, %s2054_s4 }
 0x369   :  { %v526_v32 = vpop.permute.xlu1 %525 }
 0x36b   :  { %v530_v33 = vpop.permute.xlu0 %529 }
 0x36c   :  { %v532_v34 = vsel %vm138_vm1, %v526_v32, %v530_v33 }
 0x36d   :  { %1741 = vmatmul.mubr.msk.f32.vlgmr.msra.gmra.mxu1 %vm344_vm2, %v532_v34 }
 0x36e   :  { %883 = vmatpush1.msra.mxu1 %v2145_v12  ;;  %930 = vmatprep.mubr.f32.mxu1 %v2052_v0 }
 0x36f   :  { %884 = vmatprep.subr.mxu1 %v2147_v13 }
 0x370   :  { %885 = vmatpush1.msra.mxu1 %v2151_v15 }
 0x371   :  { %886 = vmatprep.subr.mxu1 %v2154_v16 }
 0x372   :  { %887 = vmatpush1.msra.mxu1 %v2157_v18 }
 0x373   :  { %888 = vmatprep.subr.mxu1 %v2160_v20 }
 0x374   :  { %889 = vmatpush1.msra.mxu1 %v2164_v21 }
 0x375   :  { %890 = vmatprep.subr.mxu1 %v2168_v22 }
 0x376   :  { %891 = vmatpush1.msra.mxu1 %v2171_v23 }
 0x377   :  { %892 = vmatprep.subr.mxu1 %v2175_v24 }
 0x378   :  { %893 = vmatpush1.msra.mxu1 %v2179_v25 }
 0x379   :  { %894 = vmatprep.subr.mxu1 %v2183_v26 }
 0x37a   :  { %895 = vmatpush1.msra.mxu1 %v2187_v27 }
 0x37b   :  { %896 = vmatprep.subr.mxu1 %v2191_v28 }
 0x37c   :  { %897 = vmatpush1.msra.mxu1 %v2195_v29 }
 0x37d   :  { %1212 = vmatprep.subr.mxu1 %v2143_v11 }
 0x42d   :  { %v602_v35 = vpop.f32.mrf.mxu1 }
 0x42e   :  { %v608_v37 = vadd.f32 %v607_v36, %v602_v35 }
 0x42f   :  { %v604_v38 = vpop.f32.mrf.mxu1 }
 0x430   :  { %1825 = vtanh.f32 %v608_v37  ;;  %v610_v40 = vadd.f32 %v609_v39, %v604_v38  ;;  %v1742_v43 = vmul.f32 -1.442695, %v608_v37 }
 0x432   :  { %1827 = vtanh.f32 %v610_v40  ;;  %v1743_v44 = vmul.f32 -1.442695, %v610_v40 }
 0x433   :  { %1829 = vpow2.f32 %v1742_v43 }
 0x434   :  { %1831 = vpow2.f32 %v1743_v44 }
 0x43d   :  { %v1826_v41 = vpop.eup %1825 }
 0x43e   :  { %620 = vrot.lane.b32.xlu1 %v1826_v41, %s2054_s4 }
 0x43f   :  { %v1828_v42 = vpop.eup %1827 }
 0x440   :  { %644 = vrot.lane.b32.xlu0 %v1828_v42, %s2054_s4  ;;  %v1830_v45 = vpop.eup %1829 }
 0x441   :  { %v1832_v46 = vpop.eup %1831  ;;  %v614_v47 = vadd.f32 1.0, %v1830_v45 }
 0x442   :  { %v638_v48 = vadd.f32 1.0, %v1832_v46 }
 0x443   :  { %1833 = vrcp.f32 %v614_v47 }
 0x444   :  { %1835 = vrcp.f32 %v638_v48 }
 0x450   :  { %v1834_v49 = vpop.eup %1833 }
 0x451   :  { %v1836_v52 = vpop.eup %1835  ;;  %v618_v55 = vmul.f32 %v1834_v49, %v2245_v6 }
 0x452   :  { %v642_v58 = vmul.f32 %v1836_v52, %v2248_v9 }
 0x4b0   :  { %v621_v50 = vpop.permute.xlu1 %620 }
 0x4b1   :  { %v623_v51 = vmul.f32 %v1834_v49, %v621_v50 }
 0x4b2   :  { %v645_v53 = vpop.permute.xlu0 %644 }
 0x4b3   :  { %625 = vrot.lane.b32.xlu1 %v623_v51, %s2053_s2  ;;  %v647_v54 = vmul.f32 %v1836_v52, %v645_v53 }
 0x4b5   :  { %649 = vrot.lane.b32.xlu0 %v647_v54, %s2053_s2 }
 0x525   :  { %v626_v56 = vpop.permute.xlu1 %625 }
 0x526   :  { %v2285_v57 = vadd.f32 %v626_v56, %v618_v55 }
 0x527   :  { %v650_v59 = vpop.permute.xlu0 %649 }
 0x528   :  { %1837 = vtanh.f32 %v2285_v57  ;;  %v2289_v60 = vadd.f32 %v650_v59, %v642_v58 }
 0x52a   :  { %1839 = vtanh.f32 %v2289_v60 }
 0x535   :  { %v1838_v61 = vpop.eup %1837 }
 0x536   :  { %631 = vrot.lane.b32.xlu1 %v1838_v61, %s2054_s4  ;;  %v937_v61 = vld [vmem:[#allocation2 + $0x6] sm:$0x3] }
 0x537   :  { %v1840_v62 = vpop.eup %1839 }
 0x538   :  { %655 = vrot.lane.b32.xlu0 %v1840_v62, %s2054_s4 }
 0x5a8   :  { %v632_v63 = vpop.permute.xlu1 %631 }
 0x5a9   :  { %v2294_v1 = vmul.f32 %v1834_v49, %v632_v63 }
 0x5aa   :  { %v656_v2 = vpop.permute.xlu0 %655 }
 0x5ab   :  { %690 = vrot.lane.b32.xlu1 %v2294_v1, %s2053_s2  ;;  %v2298_v3 = vmul.f32 %v1836_v52, %v656_v2  ;;  %v939_v2 = vld [vmem:[#allocation3 + $0x8] sm:$0x3] }
 0x5ad   :  { %694 = vrot.lane.b32.xlu0 %v2298_v3, %s2054_s4 }
 0x61d   :  { %v691_v4 = vpop.permute.xlu1 %690 }
 0x61f   :  { %v695_v5 = vpop.permute.xlu0 %694 }
 0x620   :  { %v697_v6 = vsel %vm138_vm1, %v691_v4, %v695_v5 }
 0x621   :  { %1744 = vmatmul.mubr.msk.f32.vlgmr.msra.gmra.mxu0 %vm344_vm2, %v697_v6 }
 0x622   :  { %1048 = vmatpush1.msra.mxu0 %v2145_v12  ;;  %1095 = vmatprep.mubr.f32.mxu0 %v2052_v0 }
 0x623   :  { %1049 = vmatprep.subr.mxu0 %v2147_v13 }
 0x624   :  { %1050 = vmatpush1.msra.mxu0 %v2151_v15 }
 0x625   :  { %1051 = vmatprep.subr.mxu0 %v2154_v16 }
 0x626   :  { %1052 = vmatpush1.msra.mxu0 %v2157_v18 }
 0x627   :  { %1053 = vmatprep.subr.mxu0 %v2160_v20 }
 0x628   :  { %1054 = vmatpush1.msra.mxu0 %v2164_v21 }
 0x629   :  { %1055 = vmatprep.subr.mxu0 %v2168_v22 }
 0x62a   :  { %1056 = vmatpush1.msra.mxu0 %v2171_v23 }
 0x62b   :  { %1057 = vmatprep.subr.mxu0 %v2175_v24 }
 0x62c   :  { %1058 = vmatpush1.msra.mxu0 %v2179_v25 }
 0x62d   :  { %1059 = vmatprep.subr.mxu0 %v2183_v26 }
 0x62e   :  { %1060 = vmatpush1.msra.mxu0 %v2187_v27 }
 0x62f   :  { %1061 = vmatprep.subr.mxu0 %v2191_v28 }
 0x630   :  { %1062 = vmatpush1.msra.mxu0 %v2195_v29 }
 0x631   :  { %1377 = vmatprep.subr.mxu0 %v2143_v11 }
 0x6e1   :  { %v767_v7 = vpop.f32.mrf.mxu0 }
 0x6e2   :  { %v773_v9 = vadd.f32 %v772_v8, %v767_v7 }
 0x6e3   :  { %v769_v10 = vpop.f32.mrf.mxu0 }
 0x6e4   :  { %1841 = vtanh.f32 %v773_v9  ;;  %v775_v17 = vadd.f32 %v774_v14, %v769_v10  ;;  %v1745_v33 = vmul.f32 -1.442695, %v773_v9 }
 0x6e6   :  { %1843 = vtanh.f32 %v775_v17  ;;  %v1746_v34 = vmul.f32 -1.442695, %v775_v17 }
 0x6e7   :  { %1845 = vpow2.f32 %v1745_v33 }
 0x6e8   :  { %1847 = vpow2.f32 %v1746_v34 }
 0x6f1   :  { %v1842_v30 = vpop.eup %1841 }
 0x6f2   :  { %785 = vrot.lane.b32.xlu1 %v1842_v30, %s2054_s4 }
 0x6f3   :  { %v1844_v32 = vpop.eup %1843 }
 0x6f4   :  { %809 = vrot.lane.b32.xlu0 %v1844_v32, %s2054_s4  ;;  %v1846_v35 = vpop.eup %1845 }
 0x6f5   :  { %v1848_v36 = vpop.eup %1847  ;;  %v779_v37 = vadd.f32 1.0, %v1846_v35 }
 0x6f6   :  { %v803_v38 = vadd.f32 1.0, %v1848_v36 }
 0x6f7   :  { %1849 = vrcp.f32 %v779_v37 }
 0x6f8   :  { %1851 = vrcp.f32 %v803_v38 }
 0x704   :  { %v1850_v39 = vpop.eup %1849 }
 0x705   :  { %v1852_v42 = vpop.eup %1851  ;;  %v783_v45 = vmul.f32 %v1850_v39, %v2285_v57 }
 0x706   :  { %v807_v48 = vmul.f32 %v1852_v42, %v2289_v60 }
 0x764   :  { %v786_v40 = vpop.permute.xlu1 %785 }
 0x765   :  { %v788_v41 = vmul.f32 %v1850_v39, %v786_v40 }
 0x766   :  { %v810_v43 = vpop.permute.xlu0 %809 }
 0x767   :  { %790 = vrot.lane.b32.xlu1 %v788_v41, %s2053_s2  ;;  %v812_v44 = vmul.f32 %v1852_v42, %v810_v43 }
 0x769   :  { %814 = vrot.lane.b32.xlu0 %v812_v44, %s2053_s2 }
 0x7d9   :  { %v791_v46 = vpop.permute.xlu1 %790 }
 0x7da   :  { %v2326_v47 = vadd.f32 %v791_v46, %v783_v45 }
 0x7db   :  { %v815_v49 = vpop.permute.xlu0 %814 }
 0x7dc   :  { %1853 = vtanh.f32 %v2326_v47  ;;  %v2330_v50 = vadd.f32 %v815_v49, %v807_v48 }
 0x7de   :  { %1855 = vtanh.f32 %v2330_v50 }
 0x7e9   :  { %v1854_v51 = vpop.eup %1853 }
 0x7ea   :  { %796 = vrot.lane.b32.xlu1 %v1854_v51, %s2054_s4 }
 0x7eb   :  { %v1856_v52 = vpop.eup %1855 }
 0x7ec   :  { %820 = vrot.lane.b32.xlu0 %v1856_v52, %s2054_s4  ;;  %v1102_v52 = vld [vmem:[#allocation2 + $0x8] sm:$0x3] }
 0x85c   :  { %v797_v53 = vpop.permute.xlu1 %796 }
 0x85d   :  { %v2335_v54 = vmul.f32 %v1850_v39, %v797_v53 }
 0x85e   :  { %v821_v55 = vpop.permute.xlu0 %820 }
 0x85f   :  { %855 = vrot.lane.b32.xlu1 %v2335_v54, %s2053_s2  ;;  %v2339_v56 = vmul.f32 %v1852_v42, %v821_v55 }
 0x861   :  { %859 = vrot.lane.b32.xlu0 %v2339_v56, %s2054_s4 }
 0x8d1   :  { %v856_v57 = vpop.permute.xlu1 %855 }
 0x8d3   :  { %v860_v58 = vpop.permute.xlu0 %859 }
 0x8d4   :  { %v862_v59 = vsel %vm138_vm1, %v856_v57, %v860_v58  ;;  %v1104_v57 = vld [vmem:[#allocation3 + $0x6] sm:$0x3] }
 0x8d5   :  { %1747 = vmatmul.mubr.msk.f32.vlgmr.msra.gmra.mxu1 %vm344_vm2, %v862_v59 }
 0x8d6   :  { %1213 = vmatpush1.msra.mxu1 %v2145_v12  ;;  %1260 = vmatprep.mubr.f32.mxu1 %v2052_v0 }
 0x8d7   :  { %1214 = vmatprep.subr.mxu1 %v2147_v13 }
 0x8d8   :  { %1215 = vmatpush1.msra.mxu1 %v2151_v15 }
 0x8d9   :  { %1216 = vmatprep.subr.mxu1 %v2154_v16 }
 0x8da   :  { %1217 = vmatpush1.msra.mxu1 %v2157_v18 }
 0x8db   :  { %1218 = vmatprep.subr.mxu1 %v2160_v20 }
 0x8dc   :  { %1219 = vmatpush1.msra.mxu1 %v2164_v21 }
 0x8dd   :  { %1220 = vmatprep.subr.mxu1 %v2168_v22 }
 0x8de   :  { %1221 = vmatpush1.msra.mxu1 %v2171_v23 }
 0x8df   :  { %1222 = vmatprep.subr.mxu1 %v2175_v24 }
 0x8e0   :  { %1223 = vmatpush1.msra.mxu1 %v2179_v25 }
 0x8e1   :  { %1224 = vmatprep.subr.mxu1 %v2183_v26 }
 0x8e2   :  { %1225 = vmatpush1.msra.mxu1 %v2187_v27 }
 0x8e3   :  { %1226 = vmatprep.subr.mxu1 %v2191_v28 }
 0x8e4   :  { %1227 = vmatpush1.msra.mxu1 %v2195_v29 }
 0x8e5   :  { %1542 = vmatprep.subr.mxu1 %v2143_v11 }
 0x995   :  { %v932_v60 = vpop.f32.mrf.mxu1 }
 0x996   :  { %v938_v62 = vadd.f32 %v937_v61, %v932_v60 }
 0x997   :  { %v934_v63 = vpop.f32.mrf.mxu1 }
 0x998   :  { %1857 = vtanh.f32 %v938_v62  ;;  %v940_v4 = vadd.f32 %v939_v2, %v934_v63  ;;  %v1748_v7 = vmul.f32 -1.442695, %v938_v62 }
 0x99a   :  { %1859 = vtanh.f32 %v940_v4  ;;  %v1749_v8 = vmul.f32 -1.442695, %v940_v4 }
 0x99b   :  { %1861 = vpow2.f32 %v1748_v7 }
 0x99c   :  { %1863 = vpow2.f32 %v1749_v8 }
 0x9a5   :  { %v1858_v5 = vpop.eup %1857 }
 0x9a6   :  { %950 = vrot.lane.b32.xlu1 %v1858_v5, %s2054_s4 }
 0x9a7   :  { %v1860_v6 = vpop.eup %1859 }
 0x9a8   :  { %974 = vrot.lane.b32.xlu0 %v1860_v6, %s2054_s4  ;;  %v1862_v9 = vpop.eup %1861 }
 0x9a9   :  { %v1864_v11 = vpop.eup %1863  ;;  %v944_v10 = vadd.f32 1.0, %v1862_v9 }
 0x9aa   :  { %v968_v14 = vadd.f32 1.0, %v1864_v11 }
 0x9ab   :  { %1865 = vrcp.f32 %v944_v10 }
 0x9ac   :  { %1867 = vrcp.f32 %v968_v14 }
 0x9b8   :  { %v1866_v17 = vpop.eup %1865 }
 0x9b9   :  { %v1868_v33 = vpop.eup %1867  ;;  %v948_v36 = vmul.f32 %v1866_v17, %v2326_v47 }
 0x9ba   :  { %v972_v39 = vmul.f32 %v1868_v33, %v2330_v50 }
 0xa18   :  { %v951_v30 = vpop.permute.xlu1 %950 }
 0xa19   :  { %v953_v32 = vmul.f32 %v1866_v17, %v951_v30 }
 0xa1a   :  { %v975_v34 = vpop.permute.xlu0 %974 }
 0xa1b   :  { %955 = vrot.lane.b32.xlu1 %v953_v32, %s2053_s2  ;;  %v977_v35 = vmul.f32 %v1868_v33, %v975_v34 }
 0xa1d   :  { %979 = vrot.lane.b32.xlu0 %v977_v35, %s2053_s2 }
 0xa8d   :  { %v956_v37 = vpop.permute.xlu1 %955 }
 0xa8e   :  { %v2367_v38 = vadd.f32 %v956_v37, %v948_v36 }
 0xa8f   :  { %v980_v40 = vpop.permute.xlu0 %979 }
 0xa90   :  { %1869 = vtanh.f32 %v2367_v38  ;;  %v2371_v41 = vadd.f32 %v980_v40, %v972_v39 }
 0xa92   :  { %1871 = vtanh.f32 %v2371_v41 }
 0xa9d   :  { %v1870_v42 = vpop.eup %1869 }
 0xa9e   :  { %961 = vrot.lane.b32.xlu1 %v1870_v42, %s2054_s4 }
 0xa9f   :  { %v1872_v43 = vpop.eup %1871 }
 0xaa0   :  { %985 = vrot.lane.b32.xlu0 %v1872_v43, %s2054_s4 }
 0xb10   :  { %v962_v44 = vpop.permute.xlu1 %961 }
 0xb11   :  { %v2376_v45 = vmul.f32 %v1866_v17, %v962_v44 }
 0xb12   :  { %v986_v46 = vpop.permute.xlu0 %985 }
 0xb13   :  { %1020 = vrot.lane.b32.xlu1 %v2376_v45, %s2053_s2  ;;  %v2380_v47 = vmul.f32 %v1868_v33, %v986_v46 }
 0xb15   :  { %1024 = vrot.lane.b32.xlu0 %v2380_v47, %s2054_s4 }
 0xb85   :  { %v1021_v48 = vpop.permute.xlu1 %1020 }
 0xb87   :  { %v1025_v49 = vpop.permute.xlu0 %1024 }
 0xb88   :  { %v1027_v50 = vsel %vm138_vm1, %v1021_v48, %v1025_v49 }
 0xb89   :  { %1750 = vmatmul.mubr.msk.f32.vlgmr.msra.gmra.mxu0 %vm344_vm2, %v1027_v50 }
 0xb8a   :  { %1378 = vmatpush1.msra.mxu0 %v2145_v12  ;;  %1425 = vmatprep.mubr.f32.mxu0 %v2052_v0 }
 0xb8b   :  { %1379 = vmatprep.subr.mxu0 %v2147_v13 }
 0xb8c   :  { %1380 = vmatpush1.msra.mxu0 %v2151_v15 }
 0xb8d   :  { %1381 = vmatprep.subr.mxu0 %v2154_v16 }
 0xb8e   :  { %1382 = vmatpush1.msra.mxu0 %v2157_v18 }
 0xb8f   :  { %1383 = vmatprep.subr.mxu0 %v2160_v20 }
 0xb90   :  { %1384 = vmatpush1.msra.mxu0 %v2164_v21 }
 0xb91   :  { %1385 = vmatprep.subr.mxu0 %v2168_v22 }
 0xb92   :  { %1386 = vmatpush1.msra.mxu0 %v2171_v23 }
 0xb93   :  { %1387 = vmatprep.subr.mxu0 %v2175_v24 }
 0xb94   :  { %1388 = vmatpush1.msra.mxu0 %v2179_v25 }
 0xb95   :  { %1389 = vmatprep.subr.mxu0 %v2183_v26 }
 0xb96   :  { %1390 = vmatpush1.msra.mxu0 %v2187_v27 }
 0xb97   :  { %1391 = vmatprep.subr.mxu0 %v2191_v28 }
 0xb98   :  { %1392 = vmatpush1.msra.mxu0 %v2195_v29 }
 0xc49   :  { %v1097_v51 = vpop.f32.mrf.mxu0 }
 0xc4a   :  { %v1103_v53 = vadd.f32 %v1102_v52, %v1097_v51 }
 0xc4b   :  { %v1099_v55 = vpop.f32.mrf.mxu0 }
 0xc4c   :  { %1873 = vtanh.f32 %v1103_v53  ;;  %v1105_v58 = vadd.f32 %v1104_v57, %v1099_v55  ;;  %v1751_v61 = vmul.f32 -1.442695, %v1103_v53 }
 0xc4e   :  { %1875 = vtanh.f32 %v1105_v58  ;;  %v1752_v62 = vmul.f32 -1.442695, %v1105_v58 }
 0xc4f   :  { %1877 = vpow2.f32 %v1751_v61 }
 0xc50   :  { %1879 = vpow2.f32 %v1752_v62 }
 0xc59   :  { %v1874_v59 = vpop.eup %1873 }
 0xc5a   :  { %1115 = vrot.lane.b32.xlu1 %v1874_v59, %s2054_s4 }
 0xc5b   :  { %v1876_v60 = vpop.eup %1875 }
 0xc5c   :  { %1139 = vrot.lane.b32.xlu0 %v1876_v60, %s2054_s4  ;;  %v1878_v63 = vpop.eup %1877 }
 0xc5d   :  { %v1880_v2 = vpop.eup %1879  ;;  %v1109_v4 = vadd.f32 1.0, %v1878_v63 }
 0xc5e   :  { %v1133_v5 = vadd.f32 1.0, %v1880_v2 }
 0xc5f   :  { %1881 = vrcp.f32 %v1109_v4 }
 0xc60   :  { %1883 = vrcp.f32 %v1133_v5 }
 0xc6c   :  { %v1882_v6 = vpop.eup %1881 }
 0xc6d   :  { %v1884_v9 = vpop.eup %1883  ;;  %v1113_v14 = vmul.f32 %v1882_v6, %v2367_v38 }
 0xc6e   :  { %v1137_v32 = vmul.f32 %v1884_v9, %v2371_v41 }
 0xccc   :  { %v1116_v7 = vpop.permute.xlu1 %1115 }
 0xccd   :  { %v1118_v8 = vmul.f32 %v1882_v6, %v1116_v7  ;;  %v1432_v7 = vld [vmem:[#allocation2 + $0xc] sm:$0x3] }
 0xcce   :  { %v1140_v11 = vpop.permute.xlu0 %1139 }
 0xccf   :  { %1120 = vrot.lane.b32.xlu1 %v1118_v8, %s2053_s2  ;;  %v1142_v10 = vmul.f32 %v1884_v9, %v1140_v11  ;;  %v1434_v11 = vld [vmem:[#allocation3 + $0x2] sm:$0x3] }
 0xcd1   :  { %1144 = vrot.lane.b32.xlu0 %v1142_v10, %s2053_s2 }
 0xd41   :  { %v1121_v17 = vpop.permute.xlu1 %1120 }
 0xd42   :  { %v2407_v30 = vadd.f32 %v1121_v17, %v1113_v14 }
 0xd43   :  { %v1145_v33 = vpop.permute.xlu0 %1144 }
 0xd44   :  { %1885 = vtanh.f32 %v2407_v30  ;;  %v2411_v34 = vadd.f32 %v1145_v33, %v1137_v32 }
 0xd46   :  { %1887 = vtanh.f32 %v2411_v34 }
 0xd51   :  { %v1886_v35 = vpop.eup %1885 }
 0xd52   :  { %1126 = vrot.lane.b32.xlu1 %v1886_v35, %s2054_s4 }
 0xd53   :  { %v1888_v36 = vpop.eup %1887 }
 0xd54   :  { %1150 = vrot.lane.b32.xlu0 %v1888_v36, %s2054_s4 }
 0xdc4   :  { %v1127_v37 = vpop.permute.xlu1 %1126 }
 0xdc5   :  { %v2416_v38 = vmul.f32 %v1882_v6, %v1127_v37 }
 0xdc6   :  { %v1151_v39 = vpop.permute.xlu0 %1150 }
 0xdc7   :  { %1185 = vrot.lane.b32.xlu1 %v2416_v38, %s2053_s2  ;;  %v2420_v40 = vmul.f32 %v1884_v9, %v1151_v39 }
 0xdc9   :  { %1189 = vrot.lane.b32.xlu0 %v2420_v40, %s2054_s4 }
 0xe39   :  { %v1186_v41 = vpop.permute.xlu1 %1185 }
 0xe3b   :  { %v1190_v42 = vpop.permute.xlu0 %1189 }
 0xe3c   :  { %v1192_v43 = vsel %vm138_vm1, %v1186_v41, %v1190_v42 }
 0xe3d   :  { %1753 = vmatmul.mubr.msk.f32.vlgmr.msra.gmra.mxu1 %vm344_vm2, %v1192_v43 }
 0xe3e   :  { %1543 = vmatpush1.msra.mxu1 %v2145_v12  ;;  %1590 = vmatprep.mubr.f32.mxu1 %v2052_v0  ;;  %v1267_v12 = vld [vmem:[#allocation2 + $0xa] sm:$0x3] }
 0xe3f   :  { %1544 = vmatprep.subr.mxu1 %v2147_v13 }
 0xe40   :  { %1545 = vmatpush1.msra.mxu1 %v2151_v15 }
 0xe41   :  { %1546 = vmatprep.subr.mxu1 %v2154_v16  ;;  %v1269_v16 = vld [vmem:[#allocation3 + $0x4] sm:$0x3] }
 0xe42   :  { %1547 = vmatpush1.msra.mxu1 %v2157_v18 }
 0xe43   :  { %1548 = vmatprep.subr.mxu1 %v2160_v20 }
 0xe44   :  { %1549 = vmatpush1.msra.mxu1 %v2164_v21 }
 0xe45   :  { %1550 = vmatprep.subr.mxu1 %v2168_v22 }
 0xe46   :  { %1551 = vmatpush1.msra.mxu1 %v2171_v23 }
 0xe47   :  { %1552 = vmatprep.subr.mxu1 %v2175_v24 }
 0xe48   :  { %1553 = vmatpush1.msra.mxu1 %v2179_v25 }
 0xe49   :  { %1554 = vmatprep.subr.mxu1 %v2183_v26 }
 0xe4a   :  { %1555 = vmatpush1.msra.mxu1 %v2187_v27 }
 0xe4b   :  { %1556 = vmatprep.subr.mxu1 %v2191_v28 }
 0xe4c   :  { %1557 = vmatpush1.msra.mxu1 %v2195_v29 }
 0xefd   :  { %v1262_v0 = vpop.f32.mrf.mxu1 }
 0xefe   :  { %v1268_v13 = vadd.f32 %v1267_v12, %v1262_v0 }
 0xeff   :  { %v1264_v15 = vpop.f32.mrf.mxu1 }
 0xf00   :  { %1889 = vtanh.f32 %v1268_v13  ;;  %v1270_v18 = vadd.f32 %v1269_v16, %v1264_v15  ;;  %v1754_v22 = vmul.f32 -1.442695, %v1268_v13 }
 0xf02   :  { %1891 = vtanh.f32 %v1270_v18  ;;  %v1755_v23 = vmul.f32 -1.442695, %v1270_v18 }
 0xf03   :  { %1893 = vpow2.f32 %v1754_v22 }
 0xf04   :  { %1895 = vpow2.f32 %v1755_v23 }
 0xf0d   :  { %v1890_v20 = vpop.eup %1889 }
 0xf0e   :  { %1280 = vrot.lane.b32.xlu1 %v1890_v20, %s2054_s4 }
 0xf0f   :  { %v1892_v21 = vpop.eup %1891 }
 0xf10   :  { %1304 = vrot.lane.b32.xlu0 %v1892_v21, %s2054_s4  ;;  %v1894_v24 = vpop.eup %1893 }
 0xf11   :  { %v1896_v25 = vpop.eup %1895  ;;  %v1274_v26 = vadd.f32 1.0, %v1894_v24 }
 0xf12   :  { %v1298_v27 = vadd.f32 1.0, %v1896_v25 }
 0xf13   :  { %1897 = vrcp.f32 %v1274_v26 }
 0xf14   :  { %1899 = vrcp.f32 %v1298_v27  ;;  %v1740_v27 = vld [vmem:[%s2658_s7] ss:$0 sm:$0xff] }
 0xf20   :  { %v1898_v28 = vpop.eup %1897 }
 0xf21   :  { %v1900_v46 = vpop.eup %1899  ;;  %v1278_v50 = vmul.f32 %v1898_v28, %v2407_v30 }
 0xf22   :  { %v1302_v53 = vmul.f32 %v1900_v46, %v2411_v34 }
 0xf80   :  { %v1281_v29 = vpop.permute.xlu1 %1280 }
 0xf81   :  { %v1283_v44 = vmul.f32 %v1898_v28, %v1281_v29 }
 0xf82   :  { %v1305_v48 = vpop.permute.xlu0 %1304 }
 0xf83   :  { %1285 = vrot.lane.b32.xlu1 %v1283_v44, %s2053_s2  ;;  %v1307_v49 = vmul.f32 %v1900_v46, %v1305_v48 }
 0xf85   :  { %1309 = vrot.lane.b32.xlu0 %v1307_v49, %s2053_s2 }
 0xff5   :  { %v1286_v51 = vpop.permute.xlu1 %1285 }
 0xff6   :  { %v1288_v52 = vadd.f32 %v1286_v51, %v1278_v50 }
 0xff7   :  { %v1310_v55 = vpop.permute.xlu0 %1309 }
 0xff8   :  { %1901 = vtanh.f32 %v1288_v52  ;;  %v1312_v57 = vadd.f32 %v1310_v55, %v1302_v53 }
 0xffa   :  { %1903 = vtanh.f32 %v1312_v57 }
0x1005   :  { %v1902_v58 = vpop.eup %1901 }
0x1006   :  { %1291 = vrot.lane.b32.xlu1 %v1902_v58, %s2054_s4 }
0x1007   :  { %v1904_v59 = vpop.eup %1903 }
0x1008   :  { %1315 = vrot.lane.b32.xlu0 %v1904_v59, %s2054_s4 }
0x1078   :  { %v1292_v60 = vpop.permute.xlu1 %1291 }
0x1079   :  { %v2450_v61 = vmul.f32 %v1898_v28, %v1292_v60 }
0x107a   :  { %v1316_v62 = vpop.permute.xlu0 %1315 }
0x107b   :  { %1350 = vrot.lane.b32.xlu1 %v2450_v61, %s2053_s2  ;;  %v2454_v63 = vmul.f32 %v1900_v46, %v1316_v62 }
0x107d   :  { %1354 = vrot.lane.b32.xlu0 %v2454_v63, %s2054_s4 }
0x10ed   :  { %v1351_v2 = vpop.permute.xlu1 %1350 }
0x10ef   :  { %v1355_v4 = vpop.permute.xlu0 %1354 }
0x10f0   :  { %v1357_v5 = vsel %vm138_vm1, %v1351_v2, %v1355_v4 }
0x10f1   :  { %1756 = vmatmul.mubr.msk.f32.vlgmr.msra.gmra.mxu0 %vm344_vm2, %v1357_v5 }
0x11b1   :  { %v1427_v6 = vpop.f32.mrf.mxu0 }
0x11b2   :  { %v1433_v8 = vadd.f32 %v1432_v7, %v1427_v6 }
0x11b3   :  { %v1429_v9 = vpop.f32.mrf.mxu0 }
0x11b4   :  { %1905 = vtanh.f32 %v1433_v8  ;;  %v1435_v10 = vadd.f32 %v1434_v11, %v1429_v9  ;;  %v1757_v30 = vmul.f32 -1.442695, %v1433_v8 }
0x11b6   :  { %1907 = vtanh.f32 %v1435_v10  ;;  %v1758_v32 = vmul.f32 -1.442695, %v1435_v10 }
0x11b7   :  { %1909 = vpow2.f32 %v1757_v30 }
0x11b8   :  { %1911 = vpow2.f32 %v1758_v32 }
0x11c1   :  { %v1906_v14 = vpop.eup %1905 }
0x11c2   :  { %1445 = vrot.lane.b32.xlu1 %v1906_v14, %s2054_s4 }
0x11c3   :  { %v1908_v17 = vpop.eup %1907 }
0x11c4   :  { %1469 = vrot.lane.b32.xlu0 %v1908_v17, %s2054_s4  ;;  %v1910_v33 = vpop.eup %1909 }
0x11c5   :  { %v1912_v34 = vpop.eup %1911  ;;  %v1439_v35 = vadd.f32 1.0, %v1910_v33  ;;  %v1599_v33 = vld [vmem:[#allocation3] sm:$0x3] }
0x11c6   :  { %v1463_v36 = vadd.f32 1.0, %v1912_v34 }
0x11c7   :  { %1913 = vrcp.f32 %v1439_v35 }
0x11c8   :  { %1915 = vrcp.f32 %v1463_v36 }
0x11d4   :  { %v1914_v37 = vpop.eup %1913 }
0x11d5   :  { %v1916_v42 = vpop.eup %1915  ;;  %v1443_v12 = vmul.f32 %v1914_v37, %v1288_v52 }
0x11d6   :  { %v1467_v16 = vmul.f32 %v1916_v42, %v1312_v57  ;;  %v497_v57 = vlaneseq }
0x11d8   :  { %v498_v58 = vand.u32 127, %v497_v57  ;;  %v500_v59 = vshrl.u32 %v497_v57, 7 }
0x11da   :  { %v2502_v60 = vsub.s32 %v498_v58, %v500_v59 }
0x1234   :  { %v1446_v39 = vpop.permute.xlu1 %1445 }
0x1235   :  { %v1448_v41 = vmul.f32 %v1914_v37, %v1446_v39 }
0x1236   :  { %v1470_v43 = vpop.permute.xlu0 %1469 }
0x1237   :  { %1450 = vrot.lane.b32.xlu1 %v1448_v41, %s2053_s2  ;;  %v1472_v0 = vmul.f32 %v1916_v42, %v1470_v43 }
0x1239   :  { %1474 = vrot.lane.b32.xlu0 %v1472_v0, %s2053_s2 }
0x12a9   :  { %v1451_v13 = vpop.permute.xlu1 %1450 }
0x12aa   :  { %v2464_v15 = vadd.f32 %v1451_v13, %v1443_v12 }
0x12ab   :  { %v1475_v18 = vpop.permute.xlu0 %1474 }
0x12ac   :  { %1917 = vtanh.f32 %v2464_v15  ;;  %v2467_v20 = vadd.f32 %v1475_v18, %v1467_v16 }
0x12ae   :  { %1919 = vtanh.f32 %v2467_v20 }
0x12b9   :  { %v1918_v21 = vpop.eup %1917 }
0x12ba   :  { %1456 = vrot.lane.b32.xlu1 %v1918_v21, %s2054_s4 }
0x12bb   :  { %v1920_v22 = vpop.eup %1919 }
0x12bc   :  { %1480 = vrot.lane.b32.xlu0 %v1920_v22, %s2054_s4 }
0x132c   :  { %v1457_v23 = vpop.permute.xlu1 %1456 }
0x132d   :  { %v2472_v24 = vmul.f32 %v1914_v37, %v1457_v23 }
0x132e   :  { %v1481_v25 = vpop.permute.xlu0 %1480 }
0x132f   :  { %1515 = vrot.lane.b32.xlu1 %v2472_v24, %s2053_s2  ;;  %v2476_v26 = vmul.f32 %v1916_v42, %v1481_v25 }
0x1331   :  { %1519 = vrot.lane.b32.xlu0 %v2476_v26, %s2054_s4 }
0x1333   :  { %484 = vrot.lane.b32.xlu1 %v1740_v27, %s2055_s18 }
0x13a1   :  { %v1516_v28 = vpop.permute.xlu1 %1515 }
0x13a3   :  { %v1520_v29 = vpop.permute.xlu0 %1519 }
0x13a4   :  { %v1522_v44 = vsel %vm138_vm1, %v1516_v28, %v1520_v29 }
0x13a5   :  { %v2485_v46 = vpop.permute.xlu1 %484  ;;  %1759 = vmatmul.mubr.msk.f32.vlgmr.msra.gmra.mxu1 %vm344_vm2, %v1522_v44 }
0x13a6   :  { %v487_v48 = vmul.f32 %v2485_v46, %v2253_v19  ;;  %v659_v53 = vmul.f32 %v2294_v1, %v2485_v46  ;;  %v824_v5 = vmul.f32 %v2335_v54, %v2485_v46  ;;  %v989_v39 = vmul.f32 %v2376_v45, %v2485_v46 }
0x13a8   :  { %489 = vrot.lane.b32.xlu0 %v487_v48, %s2053_s2 }
0x13ac   :  { %506 = vrot.lane.b32.xlu0 %v1740_v27, %s2054_s4 }
0x141a   :  { %v490_v49 = vpop.permute.xlu0 %489 }
0x141b   :  { %v493_v50 = vsel %vm120_vm0, %v490_v49, 0.0 }
0x141c   :  { %494 = vadd.xlane.f32.xlu1 %v493_v50 }
0x141e   :  { %v2493_v51 = vpop.permute.xlu0 %506 }
0x141f   :  { %v509_v52 = vmul.f32 %v2493_v51, %v2257_v31  ;;  %v674_v4 = vmul.f32 %v2298_v3, %v2493_v51  ;;  %v1597_v3 = vld [vmem:[#allocation2 + $0xe] sm:$0x3]  ;;  %v839_v36 = vmul.f32 %v2339_v56, %v2493_v51  ;;  %v1004_v29 = vmul.f32 %v2380_v47, %v2493_v51 }
0x1421   :  { %511 = vrot.lane.b32.xlu0 %v509_v52, %s2053_s2  ;;  %v1154_v52 = vmul.f32 %v2416_v38, %v2485_v46 }
0x142d   :  { %661 = vrot.lane.b32.xlu1 %v659_v53, %s2053_s2 }
0x1465   :  { %v1592_v11 = vpop.f32.mrf.mxu1 }
0x1466   :  { %v1598_v10 = vadd.f32 %v1597_v3, %v1592_v11 }
0x1467   :  { %v1594_v32 = vpop.f32.mrf.mxu1 }
0x1468   :  { %1921 = vtanh.f32 %v1598_v10  ;;  %v1600_v34 = vadd.f32 %v1599_v33, %v1594_v32  ;;  %v1760_v42 = vmul.f32 -1.442695, %v1598_v10  ;;  %v1334_v32 = vmul.f32 %v2454_v63, %v2493_v51 }
0x146a   :  { %1923 = vtanh.f32 %v1600_v34  ;;  %v1761_v41 = vmul.f32 -1.442695, %v1600_v34 }
0x146c   :  { %1925 = vpow2.f32 %v1761_v41 }
0x146d   :  { %1927 = vpow2.f32 %v1760_v42  ;;  %v1499_v42 = vmul.f32 %v2476_v26, %v2493_v51 }
0x1475   :  { %v1922_v35 = vpop.eup %1921 }
0x1477   :  { %v1924_v37 = vpop.eup %1923 }
0x1479   :  { %v1926_v45 = vpop.eup %1925 }
0x147a   :  { %v1628_v22 = vadd.f32 1.0, %v1926_v45  ;;  %v1928_v25 = vpop.eup %1927 }
0x147b   :  { %v1604_v28 = vadd.f32 1.0, %v1928_v25 }
0x147c   :  { %1929 = vrcp.f32 %v1628_v22 }
0x147d   :  { %1931 = vrcp.f32 %v1604_v28 }
0x1489   :  { %v1930_v44 = vpop.eup %1929 }
0x148a   :  { %v1932_v49 = vpop.eup %1931 }
0x148b   :  { %v1608_v38 = vmul.f32 %v1932_v49, %v2464_v15 }
0x1493   :  { %v512_v19 = vpop.permute.xlu0 %511 }
0x1494   :  { %v514_v55 = vsel %vm120_vm0, %v512_v19, 0.0 }
0x1495   :  { %515 = vadd.xlane.f32.xlu0 %v514_v55 }
0x14a5   :  { %v495_v62 = vpop.xlane.xlu1 %494 }
0x14a6   :  { %v502_v31 = vrot.slane %v495_v62, %v2502_v60 }
0x14a8   :  { %505 = vst.msk [vmem:[%s2659_s8] sm:$0x1] %vm504_vm3, %v502_v31 }
0x14a9   :  { %v662_v1 = vpop.permute.xlu1 %661 }
0x14aa   :  { %v664_v2 = vsel %vm120_vm0, %v662_v1, 0.0 }
0x14ab   :  { %665 = vadd.xlane.f32.xlu0 %v664_v2  ;;  %v1169_v2 = vmul.f32 %v2420_v40, %v2493_v51 }
0x14c1   :  { %676 = vrot.lane.b32.xlu0 %v674_v4, %s2053_s2 }
0x14c5   :  { %826 = vrot.lane.b32.xlu0 %v824_v5, %s2053_s2  ;;  %v1319_v5 = vmul.f32 %v2450_v61, %v2485_v46 }
0x151e   :  { %v516_v6 = vpop.xlane.xlu0 %515 }
0x151f   :  { %v521_v7 = vrot.slane %v516_v6, %v2502_v60 }
0x1521   :  { %523 = vst.msk [vmem:[%s2660_s9 + $0x7] sm:$0x1] %vm504_vm3, %v521_v7 }
0x1534   :  { %v666_v8 = vpop.xlane.xlu0 %665 }
0x1535   :  { %v671_v9 = vrot.slane %v666_v8, %v2502_v60 }
0x1537   :  { %673 = vst.msk [vmem:[%s2659_s8 + $0x1] sm:$0x1] %vm504_vm3, %v671_v9  ;;  %v1632_v9 = vmul.f32 %v1930_v44, %v2467_v20  ;;  %v1484_v20 = vmul.f32 %v2472_v24, %v2485_v46 }
0x1538   :  { %v677_v54 = vpop.permute.xlu0 %676 }
0x1539   :  { %v679_v14 = vsel %vm120_vm0, %v677_v54, 0.0 }
0x153a   :  { %680 = vadd.xlane.f32.xlu1 %v679_v14 }
0x153c   :  { %v827_v17 = vpop.permute.xlu0 %826 }
0x153d   :  { %v829_v30 = vsel %vm120_vm0, %v827_v17, 0.0 }
0x153e   :  { %830 = vadd.xlane.f32.xlu0 %v829_v30 }
0x154b   :  { %1610 = vrot.lane.b32.xlu1 %v1922_v35, %s2054_s4 }
0x154f   :  { %841 = vrot.lane.b32.xlu1 %v839_v36, %s2053_s2 }
0x1554   :  { %1634 = vrot.lane.b32.xlu0 %v1924_v37, %s2054_s4 }
0x1558   :  { %991 = vrot.lane.b32.xlu0 %v989_v39, %s2053_s2 }
0x15c3   :  { %v681_v43 = vpop.xlane.xlu1 %680 }
0x15c4   :  { %v686_v0 = vrot.slane %v681_v43, %v2502_v60 }
0x15c6   :  { %688 = vst.msk [vmem:[%s2660_s9 + $0x6] sm:$0x1] %vm504_vm3, %v686_v0 }
0x15c7   :  { %v1611_v56 = vpop.permute.xlu1 %1610  ;;  %v831_v12 = vpop.xlane.xlu0 %830 }
0x15c8   :  { %v836_v13 = vrot.slane %v831_v12, %v2502_v60  ;;  %v1613_v50 = vmul.f32 %v1932_v49, %v1611_v56 }
0x15ca   :  { %838 = vst.msk [vmem:[%s2659_s8 + $0x2] sm:$0x1] %vm504_vm3, %v836_v13 }
0x15cb   :  { %v842_v16 = vpop.permute.xlu1 %841  ;;  %v1635_v18 = vpop.permute.xlu0 %1634 }
0x15cc   :  { %v844_v21 = vsel %vm120_vm0, %v842_v16, 0.0  ;;  %v1637_v48 = vmul.f32 %v1930_v44, %v1635_v18 }
0x15cd   :  { %845 = vadd.xlane.f32.xlu1 %v844_v21 }
0x15cf   :  { %v992_v23 = vpop.permute.xlu0 %991 }
0x15d0   :  { %v994_v27 = vsel %vm120_vm0, %v992_v23, 0.0 }
0x15d1   :  { %995 = vadd.xlane.f32.xlu0 %v994_v27 }
0x15de   :  { %1006 = vrot.lane.b32.xlu1 %v1004_v29, %s2053_s2 }
0x15e2   :  { %1639 = vrot.lane.b32.xlu1 %v1637_v48, %s2053_s2 }
0x15e7   :  { %1615 = vrot.lane.b32.xlu0 %v1613_v50, %s2053_s2 }
0x15eb   :  { %1156 = vrot.lane.b32.xlu0 %v1154_v52, %s2053_s2 }
0x1656   :  { %v846_v53 = vpop.xlane.xlu1 %845 }
0x1657   :  { %v851_v19 = vrot.slane %v846_v53, %v2502_v60 }
0x1659   :  { %853 = vst.msk [vmem:[%s2660_s9 + $0x5] sm:$0x1] %vm504_vm3, %v851_v19 }
0x165a   :  { %v1007_v47 = vpop.permute.xlu1 %1006  ;;  %v996_v55 = vpop.xlane.xlu0 %995 }
0x165b   :  { %v1001_v57 = vrot.slane %v996_v55, %v2502_v60  ;;  %v1009_v58 = vsel %vm120_vm0, %v1007_v47, 0.0 }
0x165c   :  { %1010 = vadd.xlane.f32.xlu1 %v1009_v58 }
0x165d   :  { %1003 = vst.msk [vmem:[%s2659_s8 + $0x3] sm:$0x1] %vm504_vm3, %v1001_v57 }
0x165e   :  { %v1616_v59 = vpop.permute.xlu0 %1615  ;;  %v1640_v15 = vpop.permute.xlu1 %1639 }
0x165f   :  { %v1618_v62 = vadd.f32 %v1616_v59, %v1608_v38  ;;  %v1642_v54 = vadd.f32 %v1640_v15, %v1632_v9 }
0x1661   :  { %1933 = vtanh.f32 %v1618_v62 }
0x1662   :  { %v1157_v31 = vpop.permute.xlu0 %1156  ;;  %1935 = vtanh.f32 %v1642_v54 }
0x1663   :  { %v1159_v1 = vsel %vm120_vm0, %v1157_v31, 0.0 }
0x1664   :  { %1160 = vadd.xlane.f32.xlu0 %v1159_v1 }
0x166d   :  { %1171 = vrot.lane.b32.xlu1 %v1169_v2, %s2053_s2 }
0x166e   :  { %v1934_v4 = vpop.eup %1933 }
0x166f   :  { %v1936_v17 = vpop.eup %1935 }
0x1671   :  { %1621 = vrot.lane.b32.xlu1 %v1934_v4, %s2054_s4 }
0x1675   :  { %1321 = vrot.lane.b32.xlu1 %v1319_v5, %s2053_s2 }
0x16e5   :  { %v1011_v6 = vpop.xlane.xlu1 %1010 }
0x16e6   :  { %v1016_v7 = vrot.slane %v1011_v6, %v2502_v60 }
0x16e8   :  { %1018 = vst.msk [vmem:[%s2660_s9 + $0x4] sm:$0x1] %vm504_vm3, %v1016_v7 }
0x16e9   :  { %v1172_v40 = vpop.permute.xlu1 %1171 }
0x16ea   :  { %v1174_v8 = vsel %vm120_vm0, %v1172_v40, 0.0 }
0x16eb   :  { %1175 = vadd.xlane.f32.xlu0 %v1174_v8 }
0x16ed   :  { %v1622_v11 = vpop.permute.xlu1 %1621  ;;  %v1161_v3 = vpop.xlane.xlu0 %1160 }
0x16ee   :  { %v1166_v61 = vrot.slane %v1161_v3, %v2502_v60  ;;  %v1624_v30 = vmul.f32 %v1932_v49, %v1622_v11 }
0x16f0   :  { %1168 = vst.msk [vmem:[%s2659_s8 + $0x4] sm:$0x1] %vm504_vm3, %v1166_v61  ;;  %v1649_v33 = vmul.f32 %v1624_v30, %v2485_v46 }
0x16f1   :  { %v1322_v10 = vpop.permute.xlu1 %1321 }
0x16f2   :  { %v1324_v14 = vsel %vm120_vm0, %v1322_v10, 0.0 }
0x16f3   :  { %1325 = vadd.xlane.f32.xlu1 %v1324_v14 }
0x1701   :  { %1645 = vrot.lane.b32.xlu0 %v1936_v17, %s2054_s4 }
0x1704   :  { %1486 = vrot.lane.b32.xlu1 %v1484_v20, %s2053_s2 }
0x1705   :  { %1336 = vrot.lane.b32.xlu0 %v1334_v32, %s2053_s2 }
0x1708   :  { %1651 = vrot.lane.b32.xlu1 %v1649_v33, %s2053_s2 }
0x1774   :  { %v1176_v34 = vpop.xlane.xlu0 %1175 }
0x1775   :  { %v1181_v35 = vrot.slane %v1176_v34, %v2502_v60 }
0x1777   :  { %1183 = vst.msk [vmem:[%s2660_s9 + $0x3] sm:$0x1] %vm504_vm3, %v1181_v35 }
0x1778   :  { %v1646_v24 = vpop.permute.xlu0 %1645 }
0x1779   :  { %v1648_v36 = vmul.f32 %v1930_v44, %v1646_v24 }
0x177b   :  { %v1664_v63 = vmul.f32 %v1648_v36, %v2493_v51 }
0x177c   :  { %v1326_v37 = vpop.xlane.xlu1 %1325  ;;  %v1337_v39 = vpop.permute.xlu0 %1336 }
0x177d   :  { %v1331_v41 = vrot.slane %v1326_v37, %v2502_v60  ;;  %1666 = vrot.lane.b32.xlu1 %v1664_v63, %s2053_s2  ;;  %v1339_v46 = vsel %vm120_vm0, %v1337_v39, 0.0 }
0x177e   :  { %1340 = vadd.xlane.f32.xlu0 %v1339_v46 }
0x177f   :  { %1333 = vst.msk [vmem:[%s2659_s8 + $0x5] sm:$0x1] %vm504_vm3, %v1331_v41 }
0x1780   :  { %v1487_v43 = vpop.permute.xlu1 %1486 }
0x1781   :  { %v1489_v0 = vsel %vm120_vm0, %v1487_v43, 0.0 }
0x1784   :  { %v1652_v56 = vpop.permute.xlu1 %1651 }
0x1785   :  { %v1654_v12 = vsel %vm120_vm0, %v1652_v56, 0.0 }
0x1794   :  { %1501 = vrot.lane.b32.xlu0 %v1499_v42, %s2053_s2 }
0x17a1   :  { %1490 = vadd.xlane.f32.xlu1 %v1489_v0 }
0x17b2   :  { %1685 = vrot.lane.b32.xlu1 %v1618_v62, %s2055_s18 }
0x17d6   :  { %1655 = vadd.xlane.f32.xlu1 %v1654_v12 }
0x17ef   :  { %v1667_v13 = vpop.permute.xlu1 %1666 }
0x17f0   :  { %v1669_v45 = vsel %vm120_vm0, %v1667_v13, 0.0 }
0x17f1   :  { %1670 = vadd.xlane.f32.xlu1 %v1669_v45 }
0x1802   :  { %1690 = vrot.lane.b32.xlu1 %v1648_v36, %s2053_s2 }
0x1807   :  { %v1341_v16 = vpop.xlane.xlu0 %1340 }
0x1808   :  { %v1346_v26 = vrot.slane %v1341_v16, %v2502_v60 }
0x180a   :  { %1348 = vst.msk [vmem:[%s2660_s9 + $0x2] sm:$0x1] %vm504_vm3, %v1346_v26 }
0x180b   :  { %v1502_v51 = vpop.permute.xlu0 %1501 }
0x180c   :  { %v1504_v18 = vsel %vm120_vm0, %v1502_v51, 0.0 }
0x180d   :  { %1505 = vadd.xlane.f32.xlu0 %v1504_v18 }
0x1823   :  { %1680 = vrot.lane.b32.xlu0 %v1624_v30, %s2053_s2 }
0x1827   :  { %1695 = vrot.lane.b32.xlu0 %v1642_v54, %s2055_s18 }
0x182a   :  { %v1491_v21 = vpop.xlane.xlu1 %1490 }
0x182b   :  { %v1496_v22 = vrot.slane %v1491_v21, %v2502_v60 }
0x182d   :  { %1498 = vst.msk [vmem:[%s2659_s8 + $0x6] sm:$0x1] %vm504_vm3, %v1496_v22 }
0x182e   :  { %v1686_v23 = vpop.permute.xlu1 %1685 }
0x182f   :  { %1688 = vst.msk [vmem:[#allocation5] sm:$0x3] %vm120_vm0, %v1686_v23 }
0x185f   :  { %v1656_v25 = vpop.xlane.xlu1 %1655 }
0x1860   :  { %v1661_v27 = vrot.slane %v1656_v25, %v2502_v60 }
0x1862   :  { %1663 = vst.msk [vmem:[%s2659_s8 + $0x7] sm:$0x1] %vm504_vm3, %v1661_v27 }
0x187a   :  { %v1671_v28 = vpop.xlane.xlu1 %1670 }
0x187b   :  { %v1676_v29 = vrot.slane %v1671_v28, %v2502_v60 }
0x187d   :  { %1678 = vst.msk [vmem:[%s2660_s9] sm:$0x1] %vm504_vm3, %v1676_v29 }
0x187e   :  { %v1691_v44 = vpop.permute.xlu1 %1690 }
0x187f   :  { %1693 = vst.msk [vmem:[#allocation6] sm:$0x3] %vm120_vm0, %v1691_v44 }
0x1896   :  { %v1506_v48 = vpop.xlane.xlu0 %1505 }
0x1897   :  { %v1511_v49 = vrot.slane %v1506_v48, %v2502_v60 }
0x1899   :  { %1513 = vst.msk [vmem:[%s2660_s9 + $0x1] sm:$0x1] %vm504_vm3, %v1511_v49 }
0x189a   :  { %v1681_v50 = vpop.permute.xlu0 %1680 }
0x189b   :  { %1683 = vst.msk [vmem:[#allocation4] sm:$0x3] %vm120_vm0, %v1681_v50 }
0x189e   :  { %v1696_v52 = vpop.permute.xlu0 %1695 }
0x189f   :  { %1698 = vst.msk [vmem:[#allocation7] sm:$0x3] %vm120_vm0, %v1696_v52 }
0x18a0   :  { %1718 = vsyncpa [#allocation9], 1 }
0x18a1   :  { %1719 = vsyncpa [#allocation11], 1 }
0x18a2   :  { %1720 = vsyncpa [#allocation14], 1 }

</bundles_post_ra>
